<compile_context>
chip_gen: v7x
topology: tpu7x:2x2x1
jax: 0.10.0
libtpu: 0.0.40
codegen_flags: <defaults>
</compile_context>

<pallas_src>
import math
import jax
import jax.numpy as jnp
from jax import lax
from jax.experimental import pallas as pl
from jax.experimental.pallas import tpu as pltpu

# ----- small, module-consistent shapes -----
B, T, D = 2, 8, 32          # batch, time, hidden (in_size == size == D)
H = 4                       # attention heads
DK = D // H                 # per-head dim
HFF = 64                    # feed-forward hidden
K = 5                       # FSMN depthwise conv kernel size (sanm_shift = 0)
PAD_L = (K - 1) // 2
PAD_R = K - 1 - PAD_L
EPS = 1e-5                  # nn.LayerNorm default eps
BT = B * T

# ----- packed-parameter layout (single f32 array, width PW) -----
PW = 3 * D                               # 96 lanes
R_WQKV = 0                               # rows [0,   32): w_qkv  (D, 3D), q cols pre-scaled
R_WFF1 = R_WQKV + D                      # rows [32,  64): w_ff1  (D, HFF)   in cols [0, HFF)
R_WO   = R_WFF1 + D                      # rows [64,  96): w_o    (D, D)     in cols [0, D)
R_WFF2 = R_WO + D                        # rows [96, 160): w_ff2  (HFF, D)   in cols [0, D)
R_SM   = R_WFF2 + HFF                    # rows [160, ...): small-parameter block
# small-param rows (relative to R_SM), each padded to PW lanes
SM_LN1W, SM_LN1B, SM_LN2W, SM_LN2B = 0, 1, 2, 3
SM_BQKV, SM_BO, SM_BFF1, SM_BFF2 = 4, 5, 6, 7
SM_FSMN = 8                              # K rows of depthwise conv taps
SM_HMASK = SM_FSMN + K                   # H rows of 0/1 head-column masks
N_SM = SM_HMASK + H                      # 17 rows used
N_SM_PAD = ((N_SM + 7) // 8) * 8         # 24 (sublane aligned)
P_ROWS = R_SM + N_SM_PAD                 # 184


def _layernorm(v, w, b):
    mu = jnp.mean(v, axis=-1, keepdims=True)
    var = jnp.mean((v - mu) ** 2, axis=-1, keepdims=True)
    return (v - mu) * lax.rsqrt(var + EPS) * w + b


def encoder_layer_kernel(x_ref, mrow_ref, mcol_ref, p_ref, out_ref):
    x = x_ref[...]                                       # (BT, D)
    m_row = mrow_ref[...]                                # (B, 1, T) key-side mask
    m_col = mcol_ref[...]                                # (BT, 1)   time-step mask

    # ---- packed parameters (static ref slices, sublane offsets are 8-aligned blocks) ----
    w_qkv = p_ref[R_WQKV:R_WQKV + D, 0:3 * D]            # (D, 3D), q cols carry 1/sqrt(dk)
    w_ff1 = p_ref[R_WFF1:R_WFF1 + D, 0:HFF]              # (D, HFF)
    w_o   = p_ref[R_WO:R_WO + D, 0:D]                    # (D, D)
    w_ff2 = p_ref[R_WFF2:R_WFF2 + HFF, 0:D]              # (HFF, D)
    sm    = p_ref[R_SM:R_SM + N_SM_PAD, :]               # (24, 96) small params

    ln1_w = sm[SM_LN1W:SM_LN1W + 1, 0:D]
    ln1_b = sm[SM_LN1B:SM_LN1B + 1, 0:D]
    ln2_w = sm[SM_LN2W:SM_LN2W + 1, 0:D]
    ln2_b = sm[SM_LN2B:SM_LN2B + 1, 0:D]
    b_qkv = sm[SM_BQKV:SM_BQKV + 1, 0:3 * D]             # q part pre-scaled
    b_o   = sm[SM_BO:SM_BO + 1, 0:D]
    b_ff1 = sm[SM_BFF1:SM_BFF1 + 1, 0:HFF]
    b_ff2 = sm[SM_BFF2:SM_BFF2 + 1, 0:D]

    # ---------------- norm1 (normalize_before) ----------------
    xn = _layernorm(x, ln1_w, ln1_b)

    # ---------------- fused QKV projection ----------------
    qkv = jnp.dot(xn, w_qkv, preferred_element_type=jnp.float32) + b_qkv   # (BT, 3D)
    q = qkv[:, :D]                # already scaled by 1/sqrt(dk)
    k = qkv[:, D:2 * D]
    v = qkv[:, 2 * D:]

    # ---------------- FSMN memory block (depthwise conv via XLU rolls) ----------------
    vm = v * m_col                                                         # padded rows -> 0
    t_idx = lax.broadcasted_iota(jnp.int32, (BT, 1), 0) % T                # pos within seq
    conv = vm * sm[SM_FSMN + PAD_L:SM_FSMN + PAD_L + 1, 0:D]               # center tap
    for j in range(K):                                                     # K-1 small taps
        if j == PAD_L:
            continue
        sh = j - PAD_L                            # conv[t] += vm[t + sh] * w[j]
        rolled = pltpu.roll(vm, shift=(-sh) % BT, axis=0)   # rolled[i] == vm[(i + sh) % BT]
        valid = jnp.logical_and(t_idx >= -sh, t_idx < T - sh)   # stay inside own sequence
        conv = conv + jnp.where(valid, rolled, 0.0) * sm[SM_FSMN + j:SM_FSMN + j + 1, 0:D]
    fsmn_out = (conv + vm) * m_col

    # ---------------- multi-head attention: all heads in one batched contraction ----------
    hm = sm[SM_HMASK:SM_HMASK + H, 0:D]                  # (H, D) 0/1 head-column masks
    q3 = q.reshape(B, T, D)
    k3 = k.reshape(B, T, D)
    v3 = v.reshape(B, T, D)
    hm4 = hm[:, None, None, :]                           # (H, 1, 1, D)
    q_st = (q3[None] * hm4).reshape(H * B, T, D)         # head h only keeps its DK columns
    v_st = (v3[None] * hm4).reshape(H * B, T, D)
    k_st = jnp.broadcast_to(k3[None], (H, B, T, D)).reshape(H * B, T, D)

    key_pad = (m_row == 0.0)                             # hoisted predicate, reused below
    key_pad_st = jnp.broadcast_to(key_pad[None], (H, B, 1, T)).reshape(H * B, 1, T)

    neg = jnp.finfo(jnp.float32).min
    scores = jnp.einsum('xqd,xkd->xqk', q_st, k_st,
                        preferred_element_type=jnp.float32)        # (H*B, T, T)
    scores = jnp.where(key_pad_st, neg, scores)
    s_max = jnp.max(scores, axis=-1, keepdims=True)
    e = jnp.exp(scores - s_max)                                    # EUP
    p = e * pl.reciprocal(jnp.sum(e, axis=-1, keepdims=True), approx=True)   # EUP recip
    p = jnp.where(key_pad_st, 0.0, p)
    ctx = jnp.einsum('xqk,xkd->xqd', p, v_st,
                     preferred_element_type=jnp.float32)           # (H*B, T, D)
    # heads live in disjoint column blocks -> summing over the head axis yields full ctx
    ctx = jnp.sum(ctx.reshape(H, B, T, D), axis=0).reshape(BT, D)
    att = jnp.dot(ctx, w_o, preferred_element_type=jnp.float32) + b_o

    # residual (dropout = identity in eval, stoch_layer_coeff = 1.0)
    x1 = x + att + fsmn_out

    # ---------------- norm2 + position-wise feed-forward ----------------
    xn2 = _layernorm(x1, ln2_w, ln2_b)
    hdn = jnp.maximum(
        jnp.dot(xn2, w_ff1, preferred_element_type=jnp.float32) + b_ff1, 0.0)
    ff = jnp.dot(hdn, w_ff2, preferred_element_type=jnp.float32) + b_ff2

    out_ref[...] = x1 + ff


def pack_params(p):
    """One-time host-side packing of all layer parameters into a single f32 array.
    Also folds the 1/sqrt(d_k) attention scale into the Q columns of w_qkv / b_qkv."""
    scale = 1.0 / math.sqrt(DK)
    w_qkv = p["w_qkv"].astype(jnp.float32).at[:, :D].multiply(scale)
    b_qkv = p["b_qkv"].astype(jnp.float32).at[:, :D].multiply(scale)

    P = jnp.zeros((P_ROWS, PW), jnp.float32)
    P = P.at[R_WQKV:R_WQKV + D, 0:3 * D].set(w_qkv)
    P = P.at[R_WFF1:R_WFF1 + D, 0:HFF].set(p["w_ff1"])
    P = P.at[R_WO:R_WO + D, 0:D].set(p["w_o"])
    P = P.at[R_WFF2:R_WFF2 + HFF, 0:D].set(p["w_ff2"])

    s0 = R_SM
    P = P.at[s0 + SM_LN1W, 0:D].set(p["ln1_w"][0])
    P = P.at[s0 + SM_LN1B, 0:D].set(p["ln1_b"][0])
    P = P.at[s0 + SM_LN2W, 0:D].set(p["ln2_w"][0])
    P = P.at[s0 + SM_LN2B, 0:D].set(p["ln2_b"][0])
    P = P.at[s0 + SM_BQKV, 0:3 * D].set(b_qkv[0])
    P = P.at[s0 + SM_BO, 0:D].set(p["b_o"][0])
    P = P.at[s0 + SM_BFF1, 0:HFF].set(p["b_ff1"][0])
    P = P.at[s0 + SM_BFF2, 0:D].set(p["b_ff2"][0])
    P = P.at[s0 + SM_FSMN:s0 + SM_FSMN + K, 0:D].set(p["fsmn_w"])
    head_mask = jnp.repeat(jnp.eye(H, dtype=jnp.float32), DK, axis=1)   # (H, D)
    P = P.at[s0 + SM_HMASK:s0 + SM_HMASK + H, 0:D].set(head_mask)
    return P


def encoder_layer_sanm(x, mask, packed_params):
    """x: (B, T, D) f32, mask: (B, 1, T) f32 in {0,1}. Returns (out, mask)."""
    x_flat = x.reshape(BT, D)
    mask_row = mask                                              # (B, 1, T)
    mask_col = jnp.transpose(mask, (0, 2, 1)).reshape(BT, 1)     # (BT, 1)

    out = pl.pallas_call(
        encoder_layer_kernel,
        out_shape=jax.ShapeDtypeStruct((BT, D), jnp.float32),
        grid=(1,),                                               # whole batch, one step
        in_specs=[
            pl.BlockSpec((BT, D), lambda i: (0, 0)),             # x (flattened)
            pl.BlockSpec((B, 1, T), lambda i: (0, 0, 0)),        # key mask (row layout)
            pl.BlockSpec((BT, 1), lambda i: (0, 0)),             # step mask (col layout)
            pl.BlockSpec((P_ROWS, PW), lambda i: (0, 0)),        # packed parameters
        ],
        out_specs=pl.BlockSpec((BT, D), lambda i: (0, 0)),
    )(x_flat, mask_row, mask_col, packed_params)
    return out.reshape(B, T, D), mask


# ---------------- pure-JAX reference (same math, for verification) ----------------
def ref_forward(x, mask, p):
    def one(xb, mb):                                       # xb (T,D), mb (1,T)
        m_col = mb.T
        xn = _layernorm(xb, p["ln1_w"], p["ln1_b"])
        qkv = xn @ p["w_qkv"] + p["b_qkv"]
        q, k, v = qkv[:, :D], qkv[:, D:2 * D], qkv[:, 2 * D:]
        vm = v * m_col
        padded = jnp.pad(vm, ((PAD_L, PAD_R), (0, 0)))
        conv = sum(padded[j:j + T, :] * p["fsmn_w"][j:j + 1, :] for j in range(K))
        fsmn_out = (conv + vm) * m_col
        ctx = []
        for h in range(H):
            sl = slice(h * DK, (h + 1) * DK)
            s = (q[:, sl] / math.sqrt(DK)) @ k[:, sl].T
            s = jnp.where(mb == 0.0, jnp.finfo(jnp.float32).min, s)
            pr = jax.nn.softmax(s, axis=-1)
            pr = jnp.where(mb == 0.0, 0.0, pr)
            ctx.append(pr @ v[:, sl])
        att = jnp.concatenate(ctx, -1) @ p["w_o"] + p["b_o"]
        x1 = xb + att + fsmn_out
        xn2 = _layernorm(x1, p["ln2_w"], p["ln2_b"])
        ff = jnp.maximum(xn2 @ p["w_ff1"] + p["b_ff1"], 0.0) @ p["w_ff2"] + p["b_ff2"]
        return x1 + ff
    return jax.vmap(one)(x, mask)


if __name__ == "__main__":
    key = jax.random.PRNGKey(0)
    ks = jax.random.split(key, 14)

    def init(k, shape, scale=0.05):
        return jax.random.normal(k, shape, jnp.float32) * scale

    params = {
        "ln1_w": 1.0 + init(ks[0], (1, D)), "ln1_b": init(ks[1], (1, D)),
        "ln2_w": 1.0 + init(ks[2], (1, D)), "ln2_b": init(ks[3], (1, D)),
        "w_qkv": init(ks[4], (D, 3 * D)),  "b_qkv": init(ks[5], (1, 3 * D)),
        "fsmn_w": init(ks[6], (K, D)),                       # Conv1d(D,D,K,groups=D) squeezed
        "w_o": init(ks[7], (D, D)),        "b_o": init(ks[8], (1, D)),
        "w_ff1": init(ks[9], (D, HFF)),    "b_ff1": init(ks[10], (1, HFF)),
        "w_ff2": init(ks[11], (HFF, D)),   "b_ff2": init(ks[12], (1, D)),
    }

    x = jax.random.normal(ks[13], (B, T, D), jnp.float32)
    mask = jnp.ones((B, 1, T), jnp.float32).at[1, 0, 6:].set(0.0)  # pad last 2 steps of batch 1

    packed = pack_params(params)                      # one-time host-side packing
    out, mask_out = encoder_layer_sanm(x, mask, packed)
    out = jax.block_until_ready(out)

    ref = ref_forward(x, mask, params)
    assert out.shape == (B, T, D)
    max_err = float(jnp.max(jnp.abs(out - ref)))
    # tolerance accounts for pl.reciprocal(approx=True) in the softmax denominator
    assert bool(jnp.allclose(out, ref, atol=1e-3, rtol=1e-3)), (
        "mismatch vs reference, max err %g" % max_err)
    print("KERNEL_OK")
</pallas_src>

<mosaic_0001>
module attributes {stable_mosaic.version = 11 : i64} {
  func.func @encoder_layer_kernel(%arg0: i32, %arg1: memref<16x32xf32, #tpu.memory_space<vmem>>, %arg2: memref<2x1x8xf32, #tpu.memory_space<vmem>>, %arg3: memref<16x1xf32, #tpu.memory_space<vmem>>, %arg4: memref<184x96xf32, #tpu.memory_space<vmem>>, %arg5: memref<16x32xf32, #tpu.memory_space<vmem>>) attributes {dimension_semantics = [#tpu.dimension_semantics<arbitrary>], iteration_bounds = array<i64: 1>, scalar_prefetch = 0 : i64, scratch_operands = 0 : i64, tpu.core_type = #tpu.core_type<tc>, window_params = [{pipeline_mode = #tpu.pipeline_mode<synchronous>, transform_indices = @transform_0, window_bounds = array<i64: 16, 32>}, {pipeline_mode = #tpu.pipeline_mode<synchronous>, transform_indices = @transform_1, window_bounds = array<i64: 2, 1, 8>}, {pipeline_mode = #tpu.pipeline_mode<synchronous>, transform_indices = @transform_2, window_bounds = array<i64: 16, 1>}, {pipeline_mode = #tpu.pipeline_mode<synchronous>, transform_indices = @transform_3, window_bounds = array<i64: 184, 96>}, {pipeline_mode = #tpu.pipeline_mode<synchronous>, transform_indices = @transform_4, window_bounds = array<i64: 16, 32>}]} {
    %c0 = arith.constant 0 : index
    %c0_0 = arith.constant 0 : index
    %0 = vector.load %arg1[%c0, %c0_0] : memref<16x32xf32, #tpu.memory_space<vmem>>, vector<16x32xf32>
    %c0_1 = arith.constant 0 : index
    %c0_2 = arith.constant 0 : index
    %c0_3 = arith.constant 0 : index
    %1 = vector.load %arg2[%c0_1, %c0_2, %c0_3] : memref<2x1x8xf32, #tpu.memory_space<vmem>>, vector<2x1x8xf32>
    %c0_4 = arith.constant 0 : index
    %c0_5 = arith.constant 0 : index
    %2 = vector.load %arg3[%c0_4, %c0_5] : memref<16x1xf32, #tpu.memory_space<vmem>>, vector<16x1xf32>
    %c0_6 = arith.constant 0 : index
    %c0_7 = arith.constant 0 : index
    %3 = vector.load %arg4[%c0_6, %c0_7] : memref<184x96xf32, #tpu.memory_space<vmem>>, vector<32x96xf32>
    %c32 = arith.constant 32 : index
    %c0_8 = arith.constant 0 : index
    %4 = vector.load %arg4[%c32, %c0_8] : memref<184x96xf32, #tpu.memory_space<vmem>>, vector<32x64xf32>
    %c64 = arith.constant 64 : index
    %c0_9 = arith.constant 0 : index
    %5 = vector.load %arg4[%c64, %c0_9] : memref<184x96xf32, #tpu.memory_space<vmem>>, vector<32x32xf32>
    %c96 = arith.constant 96 : index
    %c0_10 = arith.constant 0 : index
    %6 = vector.load %arg4[%c96, %c0_10] : memref<184x96xf32, #tpu.memory_space<vmem>>, vector<64x32xf32>
    %c160 = arith.constant 160 : index
    %c0_11 = arith.constant 0 : index
    %7 = vector.load %arg4[%c160, %c0_11] : memref<184x96xf32, #tpu.memory_space<vmem>>, vector<24x96xf32>
    %8 = vector.extract_strided_slice %7 {offsets = [0, 0], sizes = [1, 32], strides = [1, 1]} : vector<24x96xf32> to vector<1x32xf32>
    %9 = vector.extract_strided_slice %7 {offsets = [1, 0], sizes = [1, 32], strides = [1, 1]} : vector<24x96xf32> to vector<1x32xf32>
    %10 = vector.extract_strided_slice %7 {offsets = [2, 0], sizes = [1, 32], strides = [1, 1]} : vector<24x96xf32> to vector<1x32xf32>
    %11 = vector.extract_strided_slice %7 {offsets = [3, 0], sizes = [1, 32], strides = [1, 1]} : vector<24x96xf32> to vector<1x32xf32>
    %12 = vector.extract_strided_slice %7 {offsets = [4, 0], sizes = [1, 96], strides = [1, 1]} : vector<24x96xf32> to vector<1x96xf32>
    %13 = vector.extract_strided_slice %7 {offsets = [5, 0], sizes = [1, 32], strides = [1, 1]} : vector<24x96xf32> to vector<1x32xf32>
    %14 = vector.extract_strided_slice %7 {offsets = [6, 0], sizes = [1, 64], strides = [1, 1]} : vector<24x96xf32> to vector<1x64xf32>
    %15 = vector.extract_strided_slice %7 {offsets = [7, 0], sizes = [1, 32], strides = [1, 1]} : vector<24x96xf32> to vector<1x32xf32>
    %cst = arith.constant dense<0.000000e+00> : vector<16xf32>
    %16 = vector.multi_reduction <add>, %0, %cst [1] : vector<16x32xf32> to vector<16xf32>
    %17 = vector.shape_cast %16 : vector<16xf32> to vector<16x1xf32>
    %cst_12 = arith.constant 3.200000e+01 : f32
    %18 = vector.broadcast %cst_12 : f32 to vector<16x1xf32>
    %19 = arith.divf %17, %18 : vector<16x1xf32>
    %20 = vector.broadcast %19 : vector<16x1xf32> to vector<16x32xf32>
    %21 = arith.subf %0, %20 : vector<16x32xf32>
    %22 = arith.mulf %21, %21 : vector<16x32xf32>
    %cst_13 = arith.constant dense<0.000000e+00> : vector<16xf32>
    %23 = vector.multi_reduction <add>, %22, %cst_13 [1] : vector<16x32xf32> to vector<16xf32>
    %24 = vector.shape_cast %23 : vector<16xf32> to vector<16x1xf32>
    %cst_14 = arith.constant 3.200000e+01 : f32
    %25 = vector.broadcast %cst_14 : f32 to vector<16x1xf32>
    %26 = arith.divf %24, %25 : vector<16x1xf32>
    %27 = vector.broadcast %19 : vector<16x1xf32> to vector<16x32xf32>
    %28 = arith.subf %0, %27 : vector<16x32xf32>
    %cst_15 = arith.constant 9.99999974E-6 : f32
    %29 = vector.broadcast %cst_15 : f32 to vector<16x1xf32>
    %30 = arith.addf %26, %29 : vector<16x1xf32>
    %31 = math.rsqrt %30 : vector<16x1xf32>
    %32 = vector.broadcast %31 : vector<16x1xf32> to vector<16x32xf32>
    %33 = arith.mulf %28, %32 : vector<16x32xf32>
    %34 = vector.broadcast %8 : vector<1x32xf32> to vector<16x32xf32>
    %35 = arith.mulf %33, %34 : vector<16x32xf32>
    %36 = vector.broadcast %9 : vector<1x32xf32> to vector<16x32xf32>
    %37 = arith.addf %35, %36 : vector<16x32xf32>
    %cst_16 = arith.constant dense<0.000000e+00> : vector<16x96xf32>
    %38 = tpu.matmul %37, %3, %cst_16 {dimension_numbers = #tpu.dot_dimension_numbers<[1], [0], [0], [1], [0, 0, 1, 1], [], []>} : vector<16x32xf32>, vector<32x96xf32>, vector<16x96xf32> -> vector<16x96xf32>
    %39 = vector.broadcast %12 : vector<1x96xf32> to vector<16x96xf32>
    %40 = arith.addf %38, %39 : vector<16x96xf32>
    %41 = vector.extract_strided_slice %40 {offsets = [0, 0], sizes = [16, 32], strides = [1, 1]} : vector<16x96xf32> to vector<16x32xf32>
    %42 = vector.extract_strided_slice %40 {offsets = [0, 32], sizes = [16, 32], strides = [1, 1]} : vector<16x96xf32> to vector<16x32xf32>
    %43 = vector.extract_strided_slice %40 {offsets = [0, 64], sizes = [16, 32], strides = [1, 1]} : vector<16x96xf32> to vector<16x32xf32>
    %44 = vector.broadcast %2 : vector<16x1xf32> to vector<16x32xf32>
    %45 = arith.mulf %43, %44 : vector<16x32xf32>
    %46 = tpu.iota {dimensions = array<i32: 0>} : vector<16x1xi32>
    %c8_i32 = arith.constant 8 : i32
    %c0_i32 = arith.constant 0 : i32
    %47 = arith.cmpi eq, %c8_i32, %c0_i32 : i32
    %c1_i32 = arith.constant 1 : i32
    %48 = arith.select %47, %c1_i32, %c8_i32 : i32
    %49 = vector.broadcast %48 : i32 to vector<16x1xi32>
    %50 = arith.remsi %46, %49 : vector<16x1xi32>
    %c0_i32_17 = arith.constant 0 : i32
    %51 = vector.broadcast %c0_i32_17 : i32 to vector<16x1xi32>
    %52 = arith.cmpi ne, %50, %51 : vector<16x1xi32>
    %c0_i32_18 = arith.constant 0 : i32
    %53 = vector.broadcast %c0_i32_18 : i32 to vector<16x1xi32>
    %54 = arith.cmpi slt, %50, %53 : vector<16x1xi32>
    %c0_i32_19 = arith.constant 0 : i32
    %55 = arith.cmpi slt, %48, %c0_i32_19 : i32
    %56 = vector.broadcast %55 : i1 to vector<16x1xi1>
    %57 = vector.broadcast %56 : vector<16x1xi1> to vector<16x1xi1>
    %58 = arith.xori %54, %57 : vector<16x1xi1>
    %59 = arith.andi %58, %52 : vector<16x1xi1>
    %60 = vector.broadcast %48 : i32 to vector<16x1xi32>
    %61 = arith.addi %50, %60 : vector<16x1xi32>
    %62 = arith.select %59, %61, %50 : vector<16x1xi1>, vector<16x1xi32>
    %63 = vector.extract_strided_slice %7 {offsets = [10, 0], sizes = [1, 32], strides = [1, 1]} : vector<24x96xf32> to vector<1x32xf32>
    %64 = vector.broadcast %63 : vector<1x32xf32> to vector<16x32xf32>
    %65 = arith.mulf %45, %64 : vector<16x32xf32>
    %c2_i32 = arith.constant 2 : i32
    %66 = tpu.dynamic_rotate %45 by %c2_i32 dim 0 : vector<16x32xf32>, i32 -> vector<16x32xf32>
    %c2_i32_20 = arith.constant 2 : i32
    %67 = vector.broadcast %c2_i32_20 : i32 to vector<16x1xi32>
    %68 = arith.cmpi sge, %62, %67 : vector<16x1xi32>
    %c10_i32 = arith.constant 10 : i32
    %69 = vector.broadcast %c10_i32 : i32 to vector<16x1xi32>
    %70 = arith.cmpi slt, %62, %69 : vector<16x1xi32>
    %71 = arith.andi %68, %70 : vector<16x1xi1>
    %cst_21 = arith.constant 0.000000e+00 : f32
    %72 = vector.shape_cast %71 : vector<16x1xi1> to vector<16x1xi1>
    %73 = vector.broadcast %72 : vector<16x1xi1> to vector<16x32xi1>
    %74 = vector.broadcast %cst_21 : f32 to vector<16x32xf32>
    %75 = arith.select %73, %66, %74 : vector<16x32xi1>, vector<16x32xf32>
    %76 = vector.extract_strided_slice %7 {offsets = [8, 0], sizes = [1, 32], strides = [1, 1]} : vector<24x96xf32> to vector<1x32xf32>
    %77 = vector.broadcast %76 : vector<1x32xf32> to vector<16x32xf32>
    %78 = arith.mulf %75, %77 : vector<16x32xf32>
    %79 = arith.addf %65, %78 : vector<16x32xf32>
    %c1_i32_22 = arith.constant 1 : i32
    %80 = tpu.dynamic_rotate %45 by %c1_i32_22 dim 0 : vector<16x32xf32>, i32 -> vector<16x32xf32>
    %c1_i32_23 = arith.constant 1 : i32
    %81 = vector.broadcast %c1_i32_23 : i32 to vector<16x1xi32>
    %82 = arith.cmpi sge, %62, %81 : vector<16x1xi32>
    %c9_i32 = arith.constant 9 : i32
    %83 = vector.broadcast %c9_i32 : i32 to vector<16x1xi32>
    %84 = arith.cmpi slt, %62, %83 : vector<16x1xi32>
    %85 = arith.andi %82, %84 : vector<16x1xi1>
    %cst_24 = arith.constant 0.000000e+00 : f32
    %86 = vector.shape_cast %85 : vector<16x1xi1> to vector<16x1xi1>
    %87 = vector.broadcast %86 : vector<16x1xi1> to vector<16x32xi1>
    %88 = vector.broadcast %cst_24 : f32 to vector<16x32xf32>
    %89 = arith.select %87, %80, %88 : vector<16x32xi1>, vector<16x32xf32>
    %90 = vector.extract_strided_slice %7 {offsets = [9, 0], sizes = [1, 32], strides = [1, 1]} : vector<24x96xf32> to vector<1x32xf32>
    %91 = vector.broadcast %90 : vector<1x32xf32> to vector<16x32xf32>
    %92 = arith.mulf %89, %91 : vector<16x32xf32>
    %93 = arith.addf %79, %92 : vector<16x32xf32>
    %c15_i32 = arith.constant 15 : i32
    %94 = tpu.dynamic_rotate %45 by %c15_i32 dim 0 : vector<16x32xf32>, i32 -> vector<16x32xf32>
    %c-1_i32 = arith.constant -1 : i32
    %95 = vector.broadcast %c-1_i32 : i32 to vector<16x1xi32>
    %96 = arith.cmpi sge, %62, %95 : vector<16x1xi32>
    %c7_i32 = arith.constant 7 : i32
    %97 = vector.broadcast %c7_i32 : i32 to vector<16x1xi32>
    %98 = arith.cmpi slt, %62, %97 : vector<16x1xi32>
    %99 = arith.andi %96, %98 : vector<16x1xi1>
    %cst_25 = arith.constant 0.000000e+00 : f32
    %100 = vector.shape_cast %99 : vector<16x1xi1> to vector<16x1xi1>
    %101 = vector.broadcast %100 : vector<16x1xi1> to vector<16x32xi1>
    %102 = vector.broadcast %cst_25 : f32 to vector<16x32xf32>
    %103 = arith.select %101, %94, %102 : vector<16x32xi1>, vector<16x32xf32>
    %104 = vector.extract_strided_slice %7 {offsets = [11, 0], sizes = [1, 32], strides = [1, 1]} : vector<24x96xf32> to vector<1x32xf32>
    %105 = vector.broadcast %104 : vector<1x32xf32> to vector<16x32xf32>
    %106 = arith.mulf %103, %105 : vector<16x32xf32>
    %107 = arith.addf %93, %106 : vector<16x32xf32>
    %c14_i32 = arith.constant 14 : i32
    %108 = tpu.dynamic_rotate %45 by %c14_i32 dim 0 : vector<16x32xf32>, i32 -> vector<16x32xf32>
    %c-2_i32 = arith.constant -2 : i32
    %109 = vector.broadcast %c-2_i32 : i32 to vector<16x1xi32>
    %110 = arith.cmpi sge, %62, %109 : vector<16x1xi32>
    %c6_i32 = arith.constant 6 : i32
    %111 = vector.broadcast %c6_i32 : i32 to vector<16x1xi32>
    %112 = arith.cmpi slt, %62, %111 : vector<16x1xi32>
    %113 = arith.andi %110, %112 : vector<16x1xi1>
    %cst_26 = arith.constant 0.000000e+00 : f32
    %114 = vector.shape_cast %113 : vector<16x1xi1> to vector<16x1xi1>
    %115 = vector.broadcast %114 : vector<16x1xi1> to vector<16x32xi1>
    %116 = vector.broadcast %cst_26 : f32 to vector<16x32xf32>
    %117 = arith.select %115, %108, %116 : vector<16x32xi1>, vector<16x32xf32>
    %118 = vector.extract_strided_slice %7 {offsets = [12, 0], sizes = [1, 32], strides = [1, 1]} : vector<24x96xf32> to vector<1x32xf32>
    %119 = vector.broadcast %118 : vector<1x32xf32> to vector<16x32xf32>
    %120 = arith.mulf %117, %119 : vector<16x32xf32>
    %121 = arith.addf %107, %120 : vector<16x32xf32>
    %122 = arith.addf %121, %45 : vector<16x32xf32>
    %123 = vector.broadcast %2 : vector<16x1xf32> to vector<16x32xf32>
    %124 = arith.mulf %122, %123 : vector<16x32xf32>
    %125 = vector.extract_strided_slice %7 {offsets = [13, 0], sizes = [4, 32], strides = [1, 1]} : vector<24x96xf32> to vector<4x32xf32>
    %126 = vector.shape_cast %41 : vector<16x32xf32> to vector<2x8x32xf32>
    %127 = vector.shape_cast %42 : vector<16x32xf32> to vector<2x8x32xf32>
    %128 = vector.shape_cast %43 : vector<16x32xf32> to vector<2x8x32xf32>
    %129 = vector.shape_cast %125 : vector<4x32xf32> to vector<4x1x1x32xf32>
    %130 = vector.shape_cast %126 : vector<2x8x32xf32> to vector<1x2x8x32xf32>
    %131 = vector.broadcast %130 : vector<1x2x8x32xf32> to vector<4x2x8x32xf32>
    %132 = vector.broadcast %129 : vector<4x1x1x32xf32> to vector<4x2x8x32xf32>
    %133 = arith.mulf %131, %132 : vector<4x2x8x32xf32>
    %134 = vector.shape_cast %133 : vector<4x2x8x32xf32> to vector<8x8x32xf32>
    %135 = vector.shape_cast %128 : vector<2x8x32xf32> to vector<1x2x8x32xf32>
    %136 = vector.broadcast %135 : vector<1x2x8x32xf32> to vector<4x2x8x32xf32>
    %137 = vector.broadcast %129 : vector<4x1x1x32xf32> to vector<4x2x8x32xf32>
    %138 = arith.mulf %136, %137 : vector<4x2x8x32xf32>
    %139 = vector.shape_cast %138 : vector<4x2x8x32xf32> to vector<8x8x32xf32>
    %140 = vector.shape_cast %127 : vector<2x8x32xf32> to vector<1x2x8x32xf32>
    %141 = vector.shape_cast %140 : vector<1x2x8x32xf32> to vector<1x2x8x32xf32>
    %142 = vector.broadcast %141 : vector<1x2x8x32xf32> to vector<4x2x8x32xf32>
    %143 = vector.shape_cast %142 : vector<4x2x8x32xf32> to vector<8x8x32xf32>
    %cst_27 = arith.constant 0.000000e+00 : f32
    %144 = vector.broadcast %cst_27 : f32 to vector<2x1x8xf32>
    %145 = arith.cmpf oeq, %1, %144 : vector<2x1x8xf32>
    %146 = vector.shape_cast %145 : vector<2x1x8xi1> to vector<1x2x1x8xi1>
    %147 = vector.shape_cast %146 : vector<1x2x1x8xi1> to vector<1x2x1x8xi1>
    %148 = vector.broadcast %147 : vector<1x2x1x8xi1> to vector<4x2x1x8xi1>
    %149 = vector.shape_cast %148 : vector<4x2x1x8xi1> to vector<8x1x8xi1>
    "tpu.trace_start"() <{level = 10 : i32, message = "xqd,xkd->xqk"}> : () -> ()
    %cst_28 = arith.constant dense<0.000000e+00> : vector<8x8x8xf32>
    %150 = tpu.matmul %134, %143, %cst_28 {dimension_numbers = #tpu.dot_dimension_numbers<[2], [2], [1], [1], [0, 0, 0, 1, 1, 1], [0], [0]>} : vector<8x8x32xf32>, vector<8x8x32xf32>, vector<8x8x8xf32> -> vector<8x8x8xf32>
    %cst_29 = arith.constant -3.40282347E+38 : f32
    "tpu.trace_stop"() : () -> ()
    %151 = vector.shape_cast %149 : vector<8x1x8xi1> to vector<8x1x8xi1>
    %152 = vector.broadcast %151 : vector<8x1x8xi1> to vector<8x8x8xi1>
    %153 = vector.broadcast %cst_29 : f32 to vector<8x8x8xf32>
    %154 = arith.select %152, %153, %150 : vector<8x8x8xi1>, vector<8x8x8xf32>
    %cst_30 = arith.constant dense<0xFF800000> : vector<8x8xf32>
    %155 = vector.multi_reduction <maximumf>, %154, %cst_30 [2] : vector<8x8x8xf32> to vector<8x8xf32>
    %156 = vector.shape_cast %155 : vector<8x8xf32> to vector<8x8x1xf32>
    %157 = vector.broadcast %156 : vector<8x8x1xf32> to vector<8x8x8xf32>
    %158 = arith.subf %154, %157 : vector<8x8x8xf32>
    %159 = math.exp %158 : vector<8x8x8xf32>
    %cst_31 = arith.constant dense<0.000000e+00> : vector<8x8xf32>
    %160 = vector.multi_reduction <add>, %159, %cst_31 [2] : vector<8x8x8xf32> to vector<8x8xf32>
    %161 = vector.shape_cast %160 : vector<8x8xf32> to vector<8x8x1xf32>
    %162 = tpu.reciprocal %161 {approx = true} : vector<8x8x1xf32> -> vector<8x8x1xf32>
    %163 = vector.broadcast %162 : vector<8x8x1xf32> to vector<8x8x8xf32>
    %164 = arith.mulf %159, %163 : vector<8x8x8xf32>
    %cst_32 = arith.constant 0.000000e+00 : f32
    %165 = vector.shape_cast %149 : vector<8x1x8xi1> to vector<8x1x8xi1>
    %166 = vector.broadcast %165 : vector<8x1x8xi1> to vector<8x8x8xi1>
    %167 = vector.broadcast %cst_32 : f32 to vector<8x8x8xf32>
    %168 = arith.select %166, %167, %164 : vector<8x8x8xi1>, vector<8x8x8xf32>
    "tpu.trace_start"() <{level = 10 : i32, message = "xqk,xkd->xqd"}> : () -> ()
    %cst_33 = arith.constant dense<0.000000e+00> : vector<8x8x32xf32>
    %169 = tpu.matmul %168, %139, %cst_33 {dimension_numbers = #tpu.dot_dimension_numbers<[2], [1], [1], [2], [0, 0, 0, 1, 1, 2], [0], [0]>} : vector<8x8x8xf32>, vector<8x8x32xf32>, vector<8x8x32xf32> -> vector<8x8x32xf32>
    "tpu.trace_stop"() : () -> ()
    %170 = vector.shape_cast %169 : vector<8x8x32xf32> to vector<4x2x8x32xf32>
    %cst_34 = arith.constant dense<0.000000e+00> : vector<2x8x32xf32>
    %171 = vector.multi_reduction <add>, %170, %cst_34 [0] : vector<4x2x8x32xf32> to vector<2x8x32xf32>
    %172 = vector.shape_cast %171 : vector<2x8x32xf32> to vector<16x32xf32>
    %cst_35 = arith.constant dense<0.000000e+00> : vector<16x32xf32>
    %173 = tpu.matmul %172, %5, %cst_35 {dimension_numbers = #tpu.dot_dimension_numbers<[1], [0], [0], [1], [0, 0, 1, 1], [], []>} : vector<16x32xf32>, vector<32x32xf32>, vector<16x32xf32> -> vector<16x32xf32>
    %174 = vector.broadcast %13 : vector<1x32xf32> to vector<16x32xf32>
    %175 = arith.addf %173, %174 : vector<16x32xf32>
    %176 = arith.addf %0, %175 : vector<16x32xf32>
    %177 = arith.addf %176, %124 : vector<16x32xf32>
    %cst_36 = arith.constant dense<0.000000e+00> : vector<16xf32>
    %178 = vector.multi_reduction <add>, %177, %cst_36 [1] : vector<16x32xf32> to vector<16xf32>
    %179 = vector.shape_cast %178 : vector<16xf32> to vector<16x1xf32>
    %cst_37 = arith.constant 3.200000e+01 : f32
    %180 = vector.broadcast %cst_37 : f32 to vector<16x1xf32>
    %181 = arith.divf %179, %180 : vector<16x1xf32>
    %182 = vector.broadcast %181 : vector<16x1xf32> to vector<16x32xf32>
    %183 = arith.subf %177, %182 : vector<16x32xf32>
    %184 = arith.mulf %183, %183 : vector<16x32xf32>
    %cst_38 = arith.constant dense<0.000000e+00> : vector<16xf32>
    %185 = vector.multi_reduction <add>, %184, %cst_38 [1] : vector<16x32xf32> to vector<16xf32>
    %186 = vector.shape_cast %185 : vector<16xf32> to vector<16x1xf32>
    %cst_39 = arith.constant 3.200000e+01 : f32
    %187 = vector.broadcast %cst_39 : f32 to vector<16x1xf32>
    %188 = arith.divf %186, %187 : vector<16x1xf32>
    %189 = vector.broadcast %181 : vector<16x1xf32> to vector<16x32xf32>
    %190 = arith.subf %177, %189 : vector<16x32xf32>
    %cst_40 = arith.constant 9.99999974E-6 : f32
    %191 = vector.broadcast %cst_40 : f32 to vector<16x1xf32>
    %192 = arith.addf %188, %191 : vector<16x1xf32>
    %193 = math.rsqrt %192 : vector<16x1xf32>
    %194 = vector.broadcast %193 : vector<16x1xf32> to vector<16x32xf32>
    %195 = arith.mulf %190, %194 : vector<16x32xf32>
    %196 = vector.broadcast %10 : vector<1x32xf32> to vector<16x32xf32>
    %197 = arith.mulf %195, %196 : vector<16x32xf32>
    %198 = vector.broadcast %11 : vector<1x32xf32> to vector<16x32xf32>
    %199 = arith.addf %197, %198 : vector<16x32xf32>
    %cst_41 = arith.constant dense<0.000000e+00> : vector<16x64xf32>
    %200 = tpu.matmul %199, %4, %cst_41 {dimension_numbers = #tpu.dot_dimension_numbers<[1], [0], [0], [1], [0, 0, 1, 1], [], []>} : vector<16x32xf32>, vector<32x64xf32>, vector<16x64xf32> -> vector<16x64xf32>
    %201 = vector.broadcast %14 : vector<1x64xf32> to vector<16x64xf32>
    %202 = arith.addf %200, %201 : vector<16x64xf32>
    %cst_42 = arith.constant 0.000000e+00 : f32
    %203 = vector.broadcast %cst_42 : f32 to vector<16x64xf32>
    %204 = arith.maximumf %202, %203 : vector<16x64xf32>
    %cst_43 = arith.constant dense<0.000000e+00> : vector<16x32xf32>
    %205 = tpu.matmul %204, %6, %cst_43 {dimension_numbers = #tpu.dot_dimension_numbers<[1], [0], [0], [1], [0, 0, 1, 1], [], []>} : vector<16x64xf32>, vector<64x32xf32>, vector<16x32xf32> -> vector<16x32xf32>
    %206 = vector.broadcast %15 : vector<1x32xf32> to vector<16x32xf32>
    %207 = arith.addf %205, %206 : vector<16x32xf32>
    %208 = arith.addf %177, %207 : vector<16x32xf32>
    %c0_44 = arith.constant 0 : index
    %c0_45 = arith.constant 0 : index
    %209 = vector.load %arg5[%c0_44, %c0_45] : memref<16x32xf32, #tpu.memory_space<vmem>>, vector<16x32xf32>
    tpu.vector_store %arg5[%c0_44, %c0_45], %208 {strides = array<i32>} : memref<16x32xf32, #tpu.memory_space<vmem>>, vector<16x32xf32>,
    return
  }
  func.func @transform_0(%arg0: i32) -> (i32, i32) {
    %c0_i32 = arith.constant 0 : i32
    %c0_i32_0 = arith.constant 0 : i32
    %c0_i32_1 = arith.constant 0 : i32
    return %c0_i32, %c0_i32_0 : i32, i32
  }
  func.func @transform_1(%arg0: i32) -> (i32, i32, i32) {
    %c0_i32 = arith.constant 0 : i32
    %c0_i32_0 = arith.constant 0 : i32
    %c0_i32_1 = arith.constant 0 : i32
    %c0_i32_2 = arith.constant 0 : i32
    return %c0_i32, %c0_i32_0, %c0_i32_1 : i32, i32, i32
  }
  func.func @transform_2(%arg0: i32) -> (i32, i32) {
    %c0_i32 = arith.constant 0 : i32
    %c0_i32_0 = arith.constant 0 : i32
    %c0_i32_1 = arith.constant 0 : i32
    return %c0_i32, %c0_i32_0 : i32, i32
  }
  func.func @transform_3(%arg0: i32) -> (i32, i32) {
    %c0_i32 = arith.constant 0 : i32
    %c0_i32_0 = arith.constant 0 : i32
    %c0_i32_1 = arith.constant 0 : i32
    return %c0_i32, %c0_i32_0 : i32, i32
  }
  func.func @transform_4(%arg0: i32) -> (i32, i32) {
    %c0_i32 = arith.constant 0 : i32
    %c0_i32_0 = arith.constant 0 : i32
    %c0_i32_1 = arith.constant 0 : i32
    return %c0_i32, %c0_i32_0 : i32, i32
  }
}

</mosaic_0001>

<bundles_post_ra>
// kernel: tpu_custom_call.1
= control target key start
LH: loop header
LB: loop body
LE: loop exit
PB: predicated region body
PF: predicated region fallthrough
CT: control target
= control target key end

     0   :  { %9 = vsyncpa [#allocation3], 0  ;;  %s2957_s0 = inlined_call_operand.vmem [shape: f32[16,32], index: 0, kind: input, shape index: {}]   ;;  %s2958_s1 = inlined_call_operand.vmem [shape: f32[2,1,8], index: 1, kind: input, shape index: {}]   ;;  %s2959_s2 = inlined_call_operand.vmem [shape: f32[16,1], index: 2, kind: input, shape index: {}]   ;;  %s2960_s3 = inlined_call_operand.hbm [shape: f32[184,96], index: 3, kind: input, shape index: {}]   ;;  %s2961_s4 = inlined_call_operand.hbm [shape: f32[16,32], index: 4, kind: output, shape index: {}]  }
   0x1   :  { %10 = vsyncpa [#allocation4], 0  ;;  %s2511_s15 = smov [#allocation2]   ;;  %s2463_s19 = scalar_lea.hbm %s2960_s3, 2944 }
   0x2   :  { %s22_s16 = sshll.u32 %s2511_s15, 4  ;;  %p2464_p0 = scmp.ne.s32.totalorder %s2960_s3, %s2463_s19  ;;  %s23_s16 = int_to_ptr.vmem [resolvable:$true] %s22_s16 }
   0x3   :  { %p2467_p1 = scmp.lt.u32.totalorder %s2463_s19, %s2960_s3 }
   0x5   :  { %p2469_p2 = pnand %p2467_p1, %p2464_p0 }
   0x7   :  { %2472 = shalt.err (!%p2469_p2)
}
   0x8   :  { %s2473_s24 = scalar_lea.vmem %s23_s16, 2944  ;;  %p2478_p4 = scmp.lt.s32.totalorder %s23_s16, %s23_s16 }
   0x9   :  { %p2474_p3 = scmp.ne.s32.totalorder %s23_s16, %s2473_s24  ;;  %p2479_p5 = scmp.lt.s32.totalorder %s2473_s24, %s2473_s24 }
   0xb   :  { %p2480_p6 = por %p2479_p5, %p2478_p4 }
   0xd   :  { %p2481_p7 = pnand %p2480_p6, %p2474_p3 }
   0xf   :  { %2484 = shalt.err (!%p2481_p7)
}
  0x10   :  { %s2512_s25 = smov 128   ;;  %s2513_s26 = smov 8  }
  0x11   :  { %28 = dma.hbm_to_vmem [thread:$0]  %s2960_s3, 2944, %s23_s16, [#allocation3], %s2512_s25, %s2512_s25, %s2513_s26  }
  0x12   :  { %2507 = dma.done.wait [#allocation3], 2944  }
  0x13   :  { %2508 = vsyncadd [#allocation3], 4294964352  ;;  %vm61_vm0 = vcmask 261120   ;;  %v2564_v0 = vld [vmem:[%s2957_s0] sm:$0xff]  ;;  %v2569_v1 = vld [vmem:[%s2957_s0 + $0x8] sm:$0xff]  ;;  %v89_v22 = vlaneseq  ;;  %v2514_v41 = vmov 0.0  }
  0x14   :  { %v62_v2 = vsel %vm61_vm0, %v2564_v0, 0.0  ;;  %v65_v3 = vsel %vm61_vm0, %v2569_v1, 0.0  ;;  %v38_v14 = vld [vmem:[#allocation2] sm:$0xff]  ;;  %v39_v15 = vld [vmem:[#allocation2 + $0x8] sm:$0xff]  ;;  %v40_v16 = vld [vmem:[#allocation2 + $0x10] sm:$0xff]  ;;  %2258 = vmatprep.subr.mxu0 %v2514_v41  ;;  %vm2515_vm1 = vmmov 0  }
  0x15   :  { %63 = vadd.xlane.f32.xlu0 %v62_v2  ;;  %v2369_v17 = vpack.c.bf16 %v39_v15, %v38_v14  ;;  %v41_v18 = vld [vmem:[#allocation2 + $0x18] sm:$0xff]  ;;  %v2579_v26 = vshrl.u32 %v89_v22, 7  ;;  %v2584_v29 = vld [vmem:[#allocation2 + $0xa0] sm:$0xff]  ;;  %2260 = vmatprep.mubr.msk.f32.mxu0 %vm2515_vm1, %v2514_v41  ;;  %s2516_s0 = smov 96   ;;  %v2517_v48 = vmov 0   ;;  %v2612_v52 = vld [vmem:[#allocation2 + $0xa8] sm:$0xff] }
  0x16   :  { %v2373_v19 = vpack.c.bf16 %v41_v18, %v40_v16  ;;  %2420 = vset.pattern.permute.xlu1 %v2517_v48  ;;  %2419 = vset.pattern.permute.xlu0 %v2517_v48  ;;  %v2518_v49 = vmov 1966171168   ;;  %v381_v53 = vcombine.high %v2612_v52, %v2612_v52  ;;  %v2146_v63 = vld.sshfl [vmem:[#allocation2 + $0xb0] sm:$0xff pattern:$0x75316420]  ;;  %vm1088_vm5 = vcmask 64512  }
  0x17   :  { %2370 = vmatprep.subr.bf16.mxu1 %v2369_v17  ;;  %v2582_v28 = vsub.s32 0, %v2579_v26  ;;  %v97_v30 = vsub.s32 1, %v2579_v26  ;;  %v103_v42 = vsub.s32 4, %v2579_v26  ;;  %v383_v50 = vunpack.c.l.s4 %v2518_v49  ;;  %v34_v15 = vld [vmem:[%s2958_s1] sm:$0x1] }
  0x18   :  { %2372 = vmatpush3.bf16.msra.mxu1 %v2369_v17  ;;  %vm468_vm2 = vcmp.eq.f32.partialorder %v34_v15, 0.0  ;;  %v35_v16 = vld [vmem:[%s2958_s1 + $0x1] sm:$0x1]  ;;  %s2519_s1 = smov 64   ;;  %vm245_vm7 = vcmp.lt.s32.totalorder %v2579_v26, 2  ;;  %vm278_vm10 = vcmp.lt.s32.totalorder %v2579_v26, 1 }
  0x19   :  { %66 = vadd.xlane.f32.xlu0 %v65_v3  ;;  %2374 = vmatprep.subr.bf16.mxu1 %v2373_v19  ;;  %v92_v31 = vrot.slane %v2584_v29, %v2582_v28  ;;  %v98_v34 = vrot.slane %v2584_v29, %v97_v30  ;;  %v104_v43 = vrot.slane %v2584_v29, %v103_v42  ;;  %v384_v51 = vunpack.c.0.s8 %v383_v50 }
  0x1a   :  { %v1068_v17 = vsel %vm468_vm2, 1, %v2517_v48  ;;  %vm469_vm3 = vcmp.eq.f32.partialorder %v35_v16, 0.0  ;;  %vm311_vm13 = vcmp.lt.s32.totalorder %v2579_v26, 7 }
  0x1b   :  { %v387_v54 = vsub.s32 %v384_v51, %v2579_v26  ;;  %v1073_v18 = vrot.slane %v1068_v17, %v2582_v28 }
  0x1c   :  { %2376 = vmatpush3.bf16.msra.mxu1 %v2373_v19  ;;  %v1069_v19 = vsel %vm469_vm3, 1, %v2517_v48 }
  0x1d   :  { %2248 = vmatprep.subr.mxu1 %v2514_v41  ;;  %v388_v55 = vrot.slane %v381_v53, %v387_v54  ;;  %v419_v3 = vrot.slane %v2146_v63, %v387_v54  ;;  %vm2694_vm4 = vcmp.eq.s32.totalorder %v1073_v18, 1 }
  0x1f   :  { %v389_v56 = vcombine.high %v388_v55, %v388_v55  ;;  %v396_v57 = vrot.slane %v388_v55, %v387_v54 }
  0x21   :  { %v403_v58 = vrot.slane %v389_v56, %v387_v54  ;;  %v404_v59 = vcombine.high %v396_v57, %v396_v57 }
  0x23   :  { %v2618_v60 = vrot.slane %v403_v58, %v2582_v28  ;;  %v2621_v61 = vrot.slane %v404_v59, %v2582_v28  ;;  %v405_v62 = vcombine.high %v403_v58, %v403_v58 }
  0xa2   :  { %v64_v4 = vpop.xlane.xlu0 %63 }
  0xa3   :  { %v69_v5 = vmul.f32 0.03125, %v64_v4 }
  0xa5   :  { %v71_v6 = vsub.f32 %v2564_v0, %v69_v5 }
  0xa6   :  { %v67_v7 = vpop.xlane.xlu0 %66 }
  0xa7   :  { %v70_v8 = vmul.f32 0.03125, %v67_v7  ;;  %v73_v9 = vmul.f32 %v71_v6, %v71_v6 }
  0xa9   :  { %v72_v10 = vsub.f32 %v2569_v1, %v70_v8  ;;  %v75_v11 = vsel %vm61_vm0, %v73_v9, 0.0 }
  0xaa   :  { %76 = vadd.xlane.f32.xlu1 %v75_v11 }
  0xab   :  { %v74_v12 = vmul.f32 %v72_v10, %v72_v10 }
  0xad   :  { %v78_v13 = vsel %vm61_vm0, %v74_v12, 0.0 }
  0xae   :  { %79 = vadd.xlane.f32.xlu1 %v78_v13 }
 0x137   :  { %v77_v20 = vpop.xlane.xlu1 %76 }
 0x138   :  { %v81_v21 = vmul.f32 0.03125, %v77_v20 }
 0x13a   :  { %v83_v23 = vadd.f32 1e-05, %v81_v21  ;;  %v1077_v21 = vrot.slane %v1069_v19, %v2582_v28 }
 0x13b   :  { %v80_v24 = vpop.xlane.xlu1 %79 }
 0x13c   :  { %2422 = vrsqrt.f32 %v83_v23  ;;  %v82_v25 = vmul.f32 0.03125, %v80_v24  ;;  %vm2705_vm6 = vcmp.eq.s32.totalorder %v1077_v21, 1 }
 0x13e   :  { %v84_v27 = vadd.f32 1e-05, %v82_v25 }
 0x140   :  { %2424 = vrsqrt.f32 %v84_v27 }
 0x146   :  { %v2423_v32 = vpop.eup %2422 }
 0x147   :  { %v87_v33 = vmul.f32 %v2423_v32, %v71_v6  ;;  %v2632_v6 = vrot.slane %v405_v62, %v2582_v28 }
 0x149   :  { %v93_v35 = vmul.f32 %v92_v31, %v87_v33 }
 0x14a   :  { %v2425_v36 = vpop.eup %2424 }
 0x14b   :  { %v88_v37 = vmul.f32 %v2425_v36, %v72_v10  ;;  %v99_v38 = vadd.f32 %v98_v34, %v93_v35  ;;  %v2647_v10 = vrot.slane %v419_v3, %v2582_v28 }
 0x14d   :  { %v94_v39 = vmul.f32 %v92_v31, %v88_v37  ;;  %2245 = vmatprep.mubr.msk.f32.mxu1 %vm61_vm0, %v99_v38 }
 0x14f   :  { %v100_v40 = vadd.f32 %v98_v34, %v94_v39 }
 0x151   :  { %2246 = vmatmul.mubr.msk.f32.vlgmr.msra.gmra.mrb[0].mxu1 %vm61_vm0, %v100_v40 }
 0x152   :  { %2250 = vmatprep.mubr.msk.f32.mxu1 %vm2515_vm1, %v2514_v41 }
 0x224   :  { %v2247_v44 = vpop.f32.mrb[0].mxu1 }
 0x225   :  { %v2604_v45 = vadd.f32 %v2247_v44, %v104_v43  ;;  %v177_v46 = vpop.f32.mrb[1].mxu1 }
 0x226   :  { %v2606_v47 = vadd.f32 %v177_v46, %v104_v43 }
 0x227   :  { %553 = vrot.lane.b32.xlu1 %v2604_v45, %s2516_s0  ;;  %v441_v8 = vmul.f32 %v2618_v60, %v2604_v45  ;;  %v443_v11 = vmul.f32 %v2621_v61, %v2604_v45  ;;  %v445_v13 = vmul.f32 %v2632_v6, %v2604_v45  ;;  %v447_v14 = vmul.f32 %v2647_v10, %v2604_v45 }
 0x228   :  { %475 = vrot.lane.b32.xlu0 %v2606_v47, %s2516_s0  ;;  %v440_v4 = vmul.f32 %v2618_v60, %v2606_v47  ;;  %v442_v5 = vmul.f32 %v2621_v61, %v2606_v47  ;;  %v444_v9 = vmul.f32 %v2632_v6, %v2606_v47  ;;  %v446_v12 = vmul.f32 %v2647_v10, %v2606_v47 }
 0x299   :  { %v554_v7 = vpop.permute.xlu1 %553 }
 0x29a   :  { %v476_v2 = vpop.permute.xlu0 %475 }
 0x29b   :  { %2249 = vmatpush3.xpose.msk.msra.mxu1 %vm61_vm0, %v476_v2  ;;  %2259 = vmatpush3.xpose.msk.msra.mxu0 %vm61_vm0, %v476_v2 }
 0x29c   :  { %2253 = vmatprep.subr.mxu1 %v2514_v41  ;;  %2268 = vmatprep.subr.mxu0 %v2514_v41 }
 0x29e   :  { %2251 = vmatmul.mubr.msk.f32.vlgmr.msra.gmra.mrb[2].mxu1 %vm61_vm0, %v440_v4  ;;  %2261 = vmatmul.mubr.msk.f32.vlgmr.msra.gmra.mrb[0].mxu0 %vm61_vm0, %v442_v5 }
 0x29f   :  { %2254 = vmatpush3.xpose.msk.msra.mxu1 %vm61_vm0, %v554_v7  ;;  %2269 = vmatpush3.xpose.msk.msra.mxu0 %vm61_vm0, %v476_v2 }
 0x2a0   :  { %2255 = vmatprep.mubr.msk.f32.mxu1 %vm2515_vm1, %v2514_v41  ;;  %2270 = vmatprep.mubr.msk.f32.mxu0 %vm2515_vm1, %v2514_v41 }
 0x2a1   :  { %2263 = vmatprep.subr.mxu1 %v2514_v41  ;;  %2278 = vmatprep.subr.mxu0 %v2514_v41 }
 0x2a2   :  { %2256 = vmatmul.mubr.msk.f32.vlgmr.msra.gmra.mrb[4].mxu1 %vm61_vm0, %v441_v8  ;;  %2271 = vmatmul.mubr.msk.f32.vlgmr.msra.gmra.mrb[2].mxu0 %vm61_vm0, %v444_v9 }
 0x2a3   :  { %2264 = vmatpush3.xpose.msk.msra.mxu1 %vm61_vm0, %v554_v7  ;;  %2279 = vmatpush3.xpose.msk.msra.mxu0 %vm61_vm0, %v476_v2 }
 0x2a4   :  { %2265 = vmatprep.mubr.msk.f32.mxu1 %vm2515_vm1, %v2514_v41  ;;  %2280 = vmatprep.mubr.msk.f32.mxu0 %vm2515_vm1, %v2514_v41 }
 0x2a5   :  { %2273 = vmatprep.subr.mxu1 %v2514_v41  ;;  %2288 = vmatprep.subr.mxu0 %v2514_v41 }
 0x2a6   :  { %2266 = vmatmul.mubr.msk.f32.vlgmr.msra.gmra.mrb[6].mxu1 %vm61_vm0, %v443_v11  ;;  %2281 = vmatmul.mubr.msk.f32.vlgmr.msra.gmra.mrb[4].mxu0 %vm61_vm0, %v446_v12 }
 0x2a7   :  { %2274 = vmatpush3.xpose.msk.msra.mxu1 %vm61_vm0, %v554_v7  ;;  %2275 = vmatprep.mubr.msk.f32.mxu1 %vm2515_vm1, %v2514_v41 }
 0x2a8   :  { %2283 = vmatprep.subr.mxu1 %v2514_v41  ;;  %2290 = vmatprep.mubr.msk.f32.mxu0 %vm2515_vm1, %v2514_v41 }
 0x2aa   :  { %2276 = vmatmul.mubr.msk.f32.vlgmr.msra.gmra.mrb[8].mxu1 %vm61_vm0, %v445_v13 }
 0x2ab   :  { %2284 = vmatpush3.xpose.msk.msra.mxu1 %vm61_vm0, %v554_v7  ;;  %2285 = vmatprep.mubr.msk.f32.mxu1 %vm2515_vm1, %v2514_v41 }
 0x2ac   :  { %2293 = vmatprep.subr.mxu1 %v2514_v41 }
 0x2ae   :  { %2286 = vmatmul.mubr.msk.f32.vlgmr.msra.gmra.mrb[10].mxu1 %vm61_vm0, %v447_v14 }
 0x2af   :  { %2295 = vmatprep.mubr.msk.f32.mxu1 %vm2515_vm1, %v2514_v41 }
 0x371   :  { %v548_v22 = vpop.f32.mrb[2].mxu1  ;;  %v699_v23 = vpop.f32.mrb[0].mxu0 }
 0x372   :  { %v2701_v24 = vsel %vm2694_vm4, -3.4028235e+38, %v548_v22  ;;  %v2252_v25 = vpop.f32.mrb[3].mxu1  ;;  %v2262_v27 = vpop.f32.mrb[1].mxu0  ;;  %v1082_v39 = vsel %vm2694_vm4, -3.4028235e+38, %v699_v23 }
 0x373   :  { %v1089_v31 = vsel %vm1088_vm5, %v2701_v24, -inf  ;;  %v1095_v49 = vsel %vm1088_vm5, %v1082_v39, -inf }
 0x374   :  { %1090 = vmax.xlane.f32.xlu1 %v1089_v31 }
 0x375   :  { %v626_v33 = vpop.f32.mrb[4].mxu1  ;;  %v845_v34 = vpop.f32.mrb[2].mxu0 }
 0x376   :  { %v2711_v35 = vsel %vm2705_vm6, -3.4028235e+38, %v626_v33  ;;  %v2257_v36 = vpop.f32.mrb[5].mxu1  ;;  %v2272_v37 = vpop.f32.mrb[3].mxu0  ;;  %v1084_v51 = vsel %vm2694_vm4, -3.4028235e+38, %v845_v34 }
 0x377   :  { %v1092_v38 = vsel %vm1088_vm5, %v2711_v35, -inf  ;;  %v1101_v55 = vsel %vm1088_vm5, %v1084_v51, -inf }
 0x378   :  { %1093 = vmax.xlane.f32.xlu0 %v1092_v38 }
 0x379   :  { %v772_v40 = vpop.f32.mrb[6].mxu1  ;;  %v991_v43 = vpop.f32.mrb[4].mxu0 }
 0x37a   :  { %v2719_v44 = vsel %vm2705_vm6, -3.4028235e+38, %v772_v40  ;;  %v2267_v46 = vpop.f32.mrb[7].mxu1  ;;  %v2282_v48 = vpop.f32.mrb[5].mxu0  ;;  %v1086_v56 = vsel %vm2694_vm4, -3.4028235e+38, %v991_v43 }
 0x37b   :  { %v1098_v50 = vsel %vm1088_vm5, %v2719_v44, -inf  ;;  %v1107_v59 = vsel %vm1088_vm5, %v1086_v56, -inf }
 0x37c   :  { %1096 = vmax.xlane.f32.xlu0 %v1095_v49  ;;  %1099 = vmax.xlane.f32.xlu1 %v1098_v50 }
 0x37d   :  { %v918_v53 = vpop.f32.mrb[8].mxu1 }
 0x37e   :  { %v2277_v54 = vpop.f32.mrb[9].mxu1  ;;  %v1085_v62 = vsel %vm2705_vm6, -3.4028235e+38, %v918_v53 }
 0x37f   :  { %v1104_v63 = vsel %vm1088_vm5, %v1085_v62, -inf }
 0x380   :  { %1102 = vmax.xlane.f32.xlu0 %v1101_v55 }
 0x381   :  { %v1064_v57 = vpop.f32.mrb[10].mxu1 }
 0x382   :  { %v2287_v58 = vpop.f32.mrb[11].mxu1  ;;  %v1087_v2 = vsel %vm2705_vm6, -3.4028235e+38, %v1064_v57 }
 0x383   :  { %v1110_v3 = vsel %vm1088_vm5, %v1087_v2, -inf }
 0x384   :  { %1108 = vmax.xlane.f32.xlu0 %v1107_v59 }
 0x38d   :  { %450 = vrot.lane.b32.xlu1 %v2621_v61, %s2519_s1 }
 0x39a   :  { %448 = vrot.lane.b32.xlu0 %v2618_v60, %s2519_s1 }
 0x3b1   :  { %1105 = vmax.xlane.f32.xlu1 %v1104_v63 }
 0x3b5   :  { %1111 = vmax.xlane.f32.xlu1 %v1110_v3 }
 0x3c6   :  { %452 = vrot.lane.b32.xlu1 %v2632_v6, %s2519_s1 }
 0x3ca   :  { %454 = vrot.lane.b32.xlu1 %v2647_v10, %s2519_s1 }
 0x401   :  { %v1091_v4 = vpop.xlane.xlu1 %1090 }
 0x402   :  { %v1113_v19 = vsub.f32 %v2701_v24, %v1091_v4 }
 0x404   :  { %v1121_v21 = vmul.f32 1.442695, %v1113_v19 }
 0x405   :  { %v1094_v61 = vpop.xlane.xlu0 %1093 }
 0x406   :  { %v1114_v23 = vsub.f32 %v2711_v35, %v1094_v61  ;;  %2426 = vpow2.f32 %v1121_v21  ;;  %v37_v61 = vld [vmem:[%s2959_s2 + $0x8] sm:$0xff] }
 0x408   :  { %v1123_v31 = vmul.f32 1.442695, %v1114_v23 }
 0x409   :  { %v1097_v60 = vpop.xlane.xlu0 %1096  ;;  %v1100_v7 = vpop.xlane.xlu1 %1099 }
 0x40a   :  { %v1115_v22 = vsub.f32 %v1082_v39, %v1097_v60  ;;  %v1116_v34 = vsub.f32 %v2719_v44, %v1100_v7  ;;  %v36_v7 = vld [vmem:[%s2959_s2] sm:$0xff]  ;;  %s2520_s2 = smov [#allocation5]  }
 0x40b   :  { %s2132_s14 = sshll.u32 %s2520_s2, 4  ;;  %s2133_s14 = int_to_ptr.vmem [resolvable:$true] %s2132_s14 }
 0x40c   :  { %v1125_v25 = vmul.f32 1.442695, %v1115_v22  ;;  %v1127_v40 = vmul.f32 1.442695, %v1116_v34  ;;  %s2485_s15 = scalar_lea.vmem %s2133_s14, 256  ;;  %p2490_p9 = scmp.lt.s32.totalorder %s2133_s14, %s2133_s14 }
 0x40d   :  { %v1103_v5 = vpop.xlane.xlu0 %1102  ;;  %v451_v13 = vpop.permute.xlu1 %450  ;;  %p2486_p8 = scmp.ne.s32.totalorder %s2133_s14, %s2485_s15  ;;  %p2491_p10 = scmp.lt.s32.totalorder %s2485_s15, %s2485_s15 }
 0x40e   :  { %v462_v6 = vmul.f32 %v451_v13, %v2606_v47  ;;  %v463_v10 = vmul.f32 %v451_v13, %v2604_v45  ;;  %v1117_v27 = vsub.f32 %v1084_v51, %v1103_v5  ;;  %2428 = vpow2.f32 %v1125_v25 }
 0x40f   :  { %2430 = vpow2.f32 %v1123_v31  ;;  %p2492_p11 = por %p2491_p10, %p2490_p9 }
 0x410   :  { %v1129_v36 = vmul.f32 1.442695, %v1117_v27  ;;  %v2427_v39 = vpop.eup %2426 }
 0x411   :  { %v1109_v8 = vpop.xlane.xlu0 %1108  ;;  %v1137_v46 = vsel %vm1088_vm5, %v2427_v39, 0.0  ;;  %p2493_p12 = pnand %p2492_p11, %p2486_p8 }
 0x412   :  { %2432 = vpow2.f32 %v1129_v36  ;;  %v1119_v43 = vsub.f32 %v1086_v56, %v1109_v8 }
 0x414   :  { %v1133_v35 = vmul.f32 1.442695, %v1119_v43 }
 0x415   :  { %v449_v9 = vpop.permute.xlu0 %448 }
 0x416   :  { %v460_v11 = vmul.f32 %v449_v9, %v2606_v47  ;;  %v461_v12 = vmul.f32 %v449_v9, %v2604_v45 }
 0x418   :  { %1186 = vrot.lane.b32.xlu0 %v460_v11, %s2519_s1  ;;  %1263 = vrot.lane.b32.xlu1 %v461_v12, %s2519_s1  ;;  %v2760_v48 = vpop.eup %2428 }
 0x419   :  { %v2762_v49 = vpop.eup %2430  ;;  %v1143_v44 = vsel %vm1088_vm5, %v2760_v48, 0.0 }
 0x41a   :  { %v1140_v51 = vsel %vm1088_vm5, %v2762_v49, 0.0 }
 0x41c   :  { %1340 = vrot.lane.b32.xlu1 %v462_v6, %s2519_s1  ;;  %v2766_v50 = vpop.eup %2432 }
 0x41d   :  { %v1149_v54 = vsel %vm1088_vm5, %v2766_v50, 0.0 }
 0x420   :  { %1417 = vrot.lane.b32.xlu1 %v463_v10, %s2519_s1 }
 0x43e   :  { %v1106_v14 = vpop.xlane.xlu1 %1105 }
 0x43f   :  { %v1118_v33 = vsub.f32 %v1085_v62, %v1106_v14 }
 0x441   :  { %v1131_v37 = vmul.f32 1.442695, %v1118_v33 }
 0x442   :  { %v1112_v15 = vpop.xlane.xlu1 %1111 }
 0x443   :  { %v1120_v38 = vsub.f32 %v1087_v2, %v1112_v15  ;;  %2434 = vpow2.f32 %v1131_v37 }
 0x444   :  { %2436 = vpow2.f32 %v1127_v40 }
 0x445   :  { %v1135_v24 = vmul.f32 1.442695, %v1120_v38 }
 0x446   :  { %v453_v16 = vpop.permute.xlu1 %452 }
 0x447   :  { %v464_v17 = vmul.f32 %v453_v16, %v2606_v47  ;;  %v465_v18 = vmul.f32 %v453_v16, %v2604_v45  ;;  %2438 = vpow2.f32 %v1135_v24 }
 0x448   :  { %2440 = vpow2.f32 %v1133_v35 }
 0x449   :  { %1571 = vrot.lane.b32.xlu1 %v465_v18, %s2519_s1  ;;  %1494 = vrot.lane.b32.xlu0 %v464_v17, %s2519_s1 }
 0x44a   :  { %v455_v2 = vpop.permute.xlu1 %454 }
 0x44b   :  { %v467_v3 = vmul.f32 %v455_v2, %v2604_v45  ;;  %v466_v5 = vmul.f32 %v455_v2, %v2606_v47  ;;  %v48_v2 = vld [vmem:[#allocation2 + $0x50] sm:$0xff] }
 0x44d   :  { %v2770_v53 = vpop.eup %2434 }
 0x44e   :  { %v2774_v55 = vpop.eup %2436  ;;  %v1152_v56 = vsel %vm1088_vm5, %v2770_v53, 0.0 }
 0x44f   :  { %v1146_v58 = vsel %vm1088_vm5, %v2774_v55, 0.0 }
 0x451   :  { %v2778_v57 = vpop.eup %2438 }
 0x452   :  { %v2782_v59 = vpop.eup %2440  ;;  %v1158_v62 = vsel %vm1088_vm5, %v2778_v57, 0.0 }
 0x453   :  { %v1155_v63 = vsel %vm1088_vm5, %v2782_v59, 0.0 }
 0x468   :  { %1138 = vadd.xlane.f32.xlu0 %v1137_v46 }
 0x46c   :  { %1144 = vadd.xlane.f32.xlu0 %v1143_v44 }
 0x46d   :  { %1141 = vadd.xlane.f32.xlu1 %v1140_v51  ;;  %v227_v51 = vsub.s32 2, %v2579_v26 }
 0x470   :  { %1150 = vadd.xlane.f32.xlu0 %v1149_v54 }
 0x471   :  { %1153 = vadd.xlane.f32.xlu1 %v1152_v56 }
 0x474   :  { %1147 = vadd.xlane.f32.xlu0 %v1146_v58 }
 0x475   :  { %1159 = vadd.xlane.f32.xlu1 %v1158_v62 }
 0x478   :  { %1156 = vadd.xlane.f32.xlu0 %v1155_v63 }
 0x486   :  { %1725 = vrot.lane.b32.xlu1 %v467_v3, %s2519_s1  ;;  %v49_v3 = vld [vmem:[#allocation2 + $0x58] sm:$0xff] }
 0x48a   :  { %v1187_v60 = vpop.permute.xlu0 %1186  ;;  %v1264_v4 = vpop.permute.xlu1 %1263  ;;  %193 = vperm.xlu1 %2420, %v37_v61   ;;  %v2381_v61 = vpack.c.bf16 %v49_v3, %v48_v2 }
 0x48b   :  { %2289 = vmatpush3.msra.mxu0 %v1187_v60  ;;  %2294 = vmatpush3.msra.mxu1 %v1264_v4  ;;  %v200_v60 = vadd.s32 8, %v2579_v26 }
 0x48c   :  { %2298 = vmatprep.subr.mxu0 %v2514_v41  ;;  %2303 = vmatprep.subr.mxu1 %v2514_v41 }
 0x48d   :  { %v212_v32 = vand.u32 7, %v200_v60 }
 0x48e   :  { %1648 = vrot.lane.b32.xlu0 %v466_v5, %s2519_s1  ;;  %v1341_v8 = vpop.permute.xlu1 %1340 }
 0x48f   :  { %vm249_vm9 = vcmp.ge.s32.totalorder %v212_v32, 2  ;;  %vm282_vm12 = vcmp.ge.s32.totalorder %v212_v32, 1  ;;  %vm317_vm15 = vcmp.lt.s32.totalorder %v212_v32, 7  ;;  %vm350_vm3 = vcmp.lt.s32.totalorder %v212_v32, 6 }
 0x492   :  { %188 = vperm.xlu0 %2419, %v36_v7   ;;  %v1418_v11 = vpop.permute.xlu1 %1417  ;;  %v263_v7 = vrot.slane %v2612_v52, %v2582_v28  ;;  %v296_v28 = vrot.slane %v2612_v52, %v97_v30 }
 0x4bb   :  { %v1495_v9 = vpop.permute.xlu0 %1494  ;;  %v1572_v13 = vpop.permute.xlu1 %1571 }
 0x4f5   :  { %v1139_v12 = vpop.xlane.xlu0 %1138 }
 0x4f6   :  { %2442 = vrcp.f32 %v1139_v12 }
 0x4f9   :  { %v1145_v6 = vpop.xlane.xlu0 %1144 }
 0x4fa   :  { %2444 = vrcp.f32 %v1145_v6  ;;  %v1142_v10 = vpop.xlane.xlu1 %1141 }
 0x4fb   :  { %2446 = vrcp.f32 %v1142_v10 }
 0x4fd   :  { %v1151_v14 = vpop.xlane.xlu0 %1150 }
 0x4fe   :  { %2448 = vrcp.f32 %v1151_v14  ;;  %v1154_v15 = vpop.xlane.xlu1 %1153 }
 0x4ff   :  { %2450 = vrcp.f32 %v1154_v15 }
 0x500   :  { %v2443_v16 = vpop.eup %2442 }
 0x501   :  { %v1148_v17 = vpop.xlane.xlu0 %1147  ;;  %v1169_v18 = vmul.f32 %v2443_v16, %v2427_v39 }
 0x502   :  { %2452 = vrcp.f32 %v1148_v17  ;;  %v1160_v19 = vpop.xlane.xlu1 %1159 }
 0x503   :  { %v1177_v21 = vsel %vm2694_vm4, 0.0, %v1169_v18  ;;  %2454 = vrcp.f32 %v1160_v19 }
 0x504   :  { %v2445_v22 = vpop.eup %2444  ;;  %2291 = vmatmul.mubr.msk.f32.vlgmr.msra.gmra.mrb[6].mxu0 %vm1088_vm5, %v1177_v21 }
 0x505   :  { %v2447_v23 = vpop.eup %2446  ;;  %2299 = vmatpush3.msra.mxu0 %v1341_v8  ;;  %v1157_v25 = vpop.xlane.xlu0 %1156  ;;  %2300 = vmatprep.mubr.msk.f32.mxu0 %vm2515_vm1, %v2514_v41  ;;  %v1171_v27 = vmul.f32 %v2445_v22, %v2760_v48  ;;  %v328_v22 = vsub.s32 3, %v2579_v26 }
 0x506   :  { %2456 = vrcp.f32 %v1157_v25  ;;  %v1726_v31 = vpop.permute.xlu1 %1725  ;;  %2308 = vmatprep.subr.mxu0 %v2514_v41  ;;  %v1170_v33 = vmul.f32 %v2447_v23, %v2762_v49 }
 0x507   :  { %v1179_v34 = vsel %vm2694_vm4, 0.0, %v1171_v27 }
 0x508   :  { %v2449_v36 = vpop.eup %2448  ;;  %2301 = vmatmul.mubr.msk.f32.vlgmr.msra.gmra.mrb[8].mxu0 %vm1088_vm5, %v1179_v34  ;;  %v1178_v37 = vsel %vm2705_vm6, 0.0, %v1170_v33 }
 0x509   :  { %2309 = vmatpush3.msra.mxu0 %v1495_v9  ;;  %2296 = vmatmul.mubr.msk.f32.vlgmr.msra.gmra.mrb[12].mxu1 %vm1088_vm5, %v1178_v37  ;;  %v1173_v38 = vmul.f32 %v2449_v36, %v2766_v50  ;;  %v2451_v43 = vpop.eup %2450  ;;  %v1649_v46 = vpop.permute.xlu0 %1648  ;;  %v329_v37 = vrot.slane %v2612_v52, %v328_v22 }
 0x50a   :  { %2304 = vmatpush3.msra.mxu1 %v1418_v11  ;;  %v2815_v40 = vpop.permute.xlu1 %193  ;;  %2310 = vmatprep.mubr.msk.f32.mxu0 %vm2515_vm1, %v2514_v41  ;;  %v1174_v44 = vmul.f32 %v2451_v43, %v2770_v53 }
 0x50b   :  { %v2821_v24 = vmul.f32 %v2815_v40, %v2604_v45  ;;  %2318 = vmatprep.subr.mxu0 %v2514_v41  ;;  %v1181_v39 = vsel %vm2694_vm4, 0.0, %v1173_v38  ;;  %2305 = vmatprep.mubr.msk.f32.mxu1 %vm2515_vm1, %v2514_v41 }
 0x50c   :  { %v2453_v35 = vpop.eup %2452  ;;  %2311 = vmatmul.mubr.msk.f32.vlgmr.msra.gmra.mrb[10].mxu0 %vm1088_vm5, %v1181_v39  ;;  %2313 = vmatprep.subr.mxu1 %v2514_v41  ;;  %v1182_v53 = vsel %vm2705_vm6, 0.0, %v1174_v44 }
 0x50d   :  { %2319 = vmatpush3.msra.mxu0 %v1649_v46  ;;  %239 = vrot.lane.b32.xlu0 %v2821_v24, %s2519_s1  ;;  %v1172_v45 = vmul.f32 %v2453_v35, %v2774_v55  ;;  %v2455_v48 = vpop.eup %2454 }
 0x50e   :  { %2320 = vmatprep.mubr.msk.f32.mxu0 %vm2515_vm1, %v2514_v41  ;;  %v1176_v62 = vmul.f32 %v2455_v48, %v2778_v57  ;;  %v46_v57 = vld [vmem:[#allocation2 + $0x40] sm:$0xff]  ;;  %v362_v48 = vrot.slane %v2612_v52, %v103_v42 }
 0x50f   :  { %v1180_v49 = vsel %vm2705_vm6, 0.0, %v1172_v45 }
 0x510   :  { %v2457_v50 = vpop.eup %2456  ;;  %2306 = vmatmul.mubr.msk.f32.vlgmr.msra.gmra.mrb[14].mxu1 %vm1088_vm5, %v1180_v49  ;;  %v1184_v20 = vsel %vm2705_vm6, 0.0, %v1176_v62 }
 0x511   :  { %2314 = vmatpush3.msra.mxu1 %v1572_v13  ;;  %v2840_v54 = vpop.permute.xlu0 %188  ;;  %2315 = vmatprep.mubr.msk.f32.mxu1 %vm2515_vm1, %v2514_v41  ;;  %v1175_v55 = vmul.f32 %v2457_v50, %v2782_v59  ;;  %v47_v59 = vld [vmem:[#allocation2 + $0x48] sm:$0xff] }
 0x512   :  { %v2847_v56 = vmul.f32 %v2840_v54, %v2606_v47  ;;  %2323 = vmatprep.subr.mxu1 %v2514_v41  ;;  %v228_v47 = vrot.slane %v2612_v52, %v227_v51  ;;  %v2377_v63 = vpack.c.bf16 %v47_v59, %v46_v57 }
 0x513   :  { %v1183_v58 = vsel %vm2694_vm4, 0.0, %v1175_v55  ;;  %vm2041_vm4 = vcmask 523264  }
 0x514   :  { %237 = vrot.lane.b32.xlu1 %v2847_v56, %s2519_s1  ;;  %2316 = vmatmul.mubr.msk.f32.vlgmr.msra.gmra.mrb[16].mxu1 %vm1088_vm5, %v1182_v53 }
 0x515   :  { %2321 = vmatmul.mubr.msk.f32.vlgmr.msra.gmra.mrb[12].mxu0 %vm1088_vm5, %v1183_v58  ;;  %2324 = vmatpush3.msra.mxu1 %v1726_v31 }
 0x516   :  { %2325 = vmatprep.mubr.msk.f32.mxu1 %vm2515_vm1, %v2514_v41  ;;  %2378 = vmatprep.subr.bf16.mxu0 %v2377_v63  ;;  %v205_v41 = vand.u32 7, %v2579_v26  ;;  %vm344_vm1 = vcmp.lt.s32.totalorder %v2579_v26, 6 }
 0x517   :  { %2380 = vmatpush3.bf16.msra.mxu0 %v2377_v63 }
 0x518   :  { %230 = vrot.lane.b32.xlu1 %v228_v47, %s2519_s1  ;;  %2326 = vmatmul.mubr.msk.f32.vlgmr.msra.gmra.mrb[18].mxu1 %vm1088_vm5, %v1184_v20  ;;  %vm248_vm8 = vcmp.ge.s32.totalorder %v205_v41, 2  ;;  %vm281_vm11 = vcmp.ge.s32.totalorder %v205_v41, 1  ;;  %vm316_vm14 = vcmp.lt.s32.totalorder %v205_v41, 7  ;;  %vm349_vm2 = vcmp.lt.s32.totalorder %v205_v41, 6 }
 0x519   :  { %2382 = vmatprep.subr.bf16.mxu0 %v2381_v61 }
 0x51b   :  { %2384 = vmatpush3.bf16.msra.mxu0 %v2381_v61 }
 0x57f   :  { %v240_v4 = vpop.permute.xlu0 %239 }
 0x580   :  { %v244_v8 = vrot.slane %v240_v4, 6  ;;  %v277_v9 = vrot.slane %v240_v4, 7  ;;  %v310_v18 = vrot.slane %v240_v4, 1  ;;  %v343_v30 = vrot.slane %v240_v4, 2 }
 0x586   :  { %v238_v5 = vpop.permute.xlu1 %237 }
 0x587   :  { %v243_v11 = vrot.slane %v238_v5, 6  ;;  %v276_v12 = vrot.slane %v238_v5, 7  ;;  %v309_v13 = vrot.slane %v238_v5, 1  ;;  %v342_v27 = vrot.slane %v238_v5, 2 }
 0x589   :  { %v247_v6 = vsel %vm245_vm7, %v244_v8, %v243_v11  ;;  %v246_v10 = vsel %vm245_vm7, %v243_v11, %v244_v8  ;;  %v280_v14 = vsel %vm278_vm10, %v277_v9, %v276_v12  ;;  %v279_v15 = vsel %vm278_vm10, %v276_v12, %v277_v9 }
 0x58a   :  { %v258_v16 = vsel %vm248_vm8, %v247_v6, 0.0  ;;  %v259_v17 = vsel %vm249_vm9, %v246_v10, 0.0  ;;  %v291_v23 = vsel %vm281_vm11, %v280_v14, 0.0  ;;  %v292_v25 = vsel %vm282_vm12, %v279_v15, 0.0 }
 0x58b   :  { %v264_v19 = vmul.f32 %v263_v7, %v258_v16  ;;  %v265_v21 = vmul.f32 %v263_v7, %v259_v17  ;;  %v312_v31 = vsel %vm311_vm13, %v309_v13, %v310_v18  ;;  %v313_v33 = vsel %vm311_vm13, %v310_v18, %v309_v13 }
 0x58c   :  { %v297_v34 = vmul.f32 %v296_v28, %v291_v23  ;;  %v298_v36 = vmul.f32 %v296_v28, %v292_v25  ;;  %v324_v38 = vsel %vm316_vm14, %v312_v31, 0.0  ;;  %v325_v43 = vsel %vm317_vm15, %v313_v33, 0.0  ;;  %v231_v28 = vpop.permute.xlu1 %230 }
 0x58d   :  { %268 = vrot.lane.b32.xlu0 %v264_v19, %s2519_s1  ;;  %270 = vrot.lane.b32.xlu1 %v265_v21, %s2519_s1  ;;  %v345_v39 = vsel %vm344_vm1, %v342_v27, %v343_v30  ;;  %v346_v35 = vsel %vm344_vm1, %v343_v30, %v342_v27  ;;  %v330_v46 = vmul.f32 %v329_v37, %v324_v38 }
 0x58e   :  { %v331_v45 = vmul.f32 %v329_v37, %v325_v43  ;;  %v357_v49 = vsel %vm349_vm2, %v345_v39, 0.0  ;;  %v358_v44 = vsel %vm350_vm3, %v346_v35, 0.0  ;;  %v233_v25 = vmul.f32 %v231_v28, %v2847_v56 }
 0x58f   :  { %v363_v50 = vmul.f32 %v362_v48, %v357_v49  ;;  %v364_v55 = vmul.f32 %v362_v48, %v358_v44  ;;  %v234_v27 = vmul.f32 %v231_v28, %v2821_v24  ;;  %v55_v28 = vld [vmem:[#allocation2 + $0x88] sm:$0xff] }
 0x591   :  { %301 = vrot.lane.b32.xlu0 %v297_v34, %s2519_s1  ;;  %303 = vrot.lane.b32.xlu1 %v298_v36, %s2519_s1 }
 0x595   :  { %334 = vrot.lane.b32.xlu0 %v330_v46, %s2519_s1  ;;  %336 = vrot.lane.b32.xlu1 %v331_v45, %s2519_s1 }
 0x599   :  { %367 = vrot.lane.b32.xlu0 %v363_v50, %s2519_s1  ;;  %369 = vrot.lane.b32.xlu1 %v364_v55, %s2519_s1  ;;  %v1817_v55 = vsub.s32 5, %v2579_v26 }
 0x5d7   :  { %v1258_v53 = vpop.f32.mrb[6].mxu0 }
 0x5d8   :  { %v2292_v58 = vpop.f32.mrb[7].mxu0  ;;  %v1801_v47 = vsel %vm61_vm0, %v1258_v53, 0.0  ;;  %v1818_v53 = vrot.slane %v2584_v29, %v1817_v55 }
 0x5db   :  { %v1412_v62 = vpop.f32.mrb[8].mxu0 }
 0x5dc   :  { %v1802_v20 = vsel %vm61_vm0, %v1412_v62, 0.0  ;;  %v1335_v42 = vpop.f32.mrb[12].mxu1  ;;  %v2302_v52 = vpop.f32.mrb[9].mxu0 }
 0x5dd   :  { %v1803_v57 = vadd.f32 %v1802_v20, %v1801_v47  ;;  %v2297_v59 = vpop.f32.mrb[13].mxu1  ;;  %v1808_v41 = vsel %vm61_vm0, %v1335_v42, 0.0 }
 0x5df   :  { %v1566_v63 = vpop.f32.mrb[10].mxu0 }
 0x5e0   :  { %v1804_v2 = vsel %vm61_vm0, %v1566_v63, 0.0  ;;  %v2312_v3 = vpop.f32.mrb[11].mxu0 }
 0x5e1   :  { %v1805_v61 = vadd.f32 %v1804_v2, %v1803_v57 }
 0x5e3   :  { %v1489_v60 = vpop.f32.mrb[14].mxu1 }
 0x5e4   :  { %v1809_v32 = vsel %vm61_vm0, %v1489_v60, 0.0  ;;  %v2307_v4 = vpop.f32.mrb[15].mxu1 }
 0x5e5   :  { %v1810_v5 = vadd.f32 %v1809_v32, %v1808_v41 }
 0x5e7   :  { %v1643_v7 = vpop.f32.mrb[16].mxu1 }
 0x5e8   :  { %v1811_v8 = vsel %vm61_vm0, %v1643_v7, 0.0  ;;  %v1720_v9 = vpop.f32.mrb[12].mxu0  ;;  %v2317_v11 = vpop.f32.mrb[17].mxu1  ;;  %v43_v7 = vld [vmem:[#allocation2 + $0x28] sm:$0xff] }
 0x5e9   :  { %v1812_v12 = vadd.f32 %v1811_v8, %v1810_v5  ;;  %v1806_v13 = vsel %vm61_vm0, %v1720_v9, 0.0  ;;  %v2322_v6 = vpop.f32.mrb[13].mxu0  ;;  %v42_v5 = vld [vmem:[#allocation2 + $0x20] sm:$0xff]  ;;  %v44_v9 = vld [vmem:[#allocation2 + $0x30] sm:$0xff]  ;;  %v45_v11 = vld [vmem:[#allocation2 + $0x38] sm:$0xff] }
 0x5ea   :  { %v1807_v10 = vadd.f32 %v1806_v13, %v1805_v61  ;;  %v2385_v8 = vpack.c.bf16 %v43_v7, %v42_v5  ;;  %v50_v13 = vld [vmem:[#allocation2 + $0x60] sm:$0xff]  ;;  %v51_v6 = vld [vmem:[#allocation2 + $0x68] sm:$0xff] }
 0x5eb   :  { %v1797_v14 = vpop.f32.mrb[18].mxu1 }
 0x5ec   :  { %v1813_v15 = vsel %vm61_vm0, %v1797_v14, 0.0  ;;  %2336 = vmatprep.mubr.msk.f32.mxu0 %vm61_vm0, %v1807_v10  ;;  %v2327_v16 = vpop.f32.mrb[19].mxu1  ;;  %2386 = vmatprep.subr.bf16.mxu1 %v2385_v8  ;;  %v52_v10 = vld [vmem:[#allocation2 + $0x70] sm:$0xff]  ;;  %v2393_v14 = vpack.c.bf16 %v51_v6, %v50_v13 }
 0x5ed   :  { %v1814_v17 = vadd.f32 %v1813_v15, %v1812_v12  ;;  %v2389_v12 = vpack.c.bf16 %v45_v11, %v44_v9  ;;  %2388 = vmatpush3.bf16.msra.mxu1 %v2385_v8  ;;  %v53_v15 = vld [vmem:[#allocation2 + $0x78] sm:$0xff] }
 0x5ee   :  { %v2397_v16 = vpack.c.bf16 %v53_v15, %v52_v10  ;;  %2394 = vmatprep.subr.bf16.mxu0 %v2393_v14 }
 0x5ef   :  { %2337 = vmatmul.mubr.msk.f32.vlgmr.msra.gmra.mrb[14].mxu0 %vm61_vm0, %v1814_v17  ;;  %2390 = vmatprep.subr.bf16.mxu1 %v2389_v12  ;;  %v54_v17 = vld [vmem:[#allocation2 + $0x80] sm:$0xff] }
 0x5f0   :  { %2396 = vmatpush3.bf16.msra.mxu0 %v2393_v14 }
 0x5f1   :  { %2392 = vmatpush3.bf16.msra.mxu1 %v2389_v12  ;;  %2398 = vmatprep.subr.bf16.mxu0 %v2397_v16 }
 0x5f4   :  { %2400 = vmatpush3.bf16.msra.mxu0 %v2397_v16 }
 0x5ff   :  { %v269_v18 = vpop.permute.xlu0 %268  ;;  %v271_v19 = vpop.permute.xlu1 %270 }
 0x600   :  { %v274_v31 = vadd.f32 %v269_v18, %v233_v25  ;;  %v275_v33 = vadd.f32 %v271_v19, %v234_v27  ;;  %v2401_v18 = vpack.c.bf16 %v55_v28, %v54_v17 }
 0x602   :  { %2402 = vmatprep.subr.bf16.mxu0 %v2401_v18 }
 0x603   :  { %v302_v21 = vpop.permute.xlu0 %301  ;;  %v304_v23 = vpop.permute.xlu1 %303  ;;  %2404 = vmatpush3.bf16.msra.mxu0 %v2401_v18 }
 0x604   :  { %v307_v36 = vadd.f32 %v302_v21, %v274_v31  ;;  %v308_v37 = vadd.f32 %v304_v23, %v275_v33  ;;  %v1941_v33 = vrot.slane %v2584_v29, %v227_v51  ;;  %v1952_v51 = vsub.s32 6, %v2579_v26 }
 0x607   :  { %v335_v30 = vpop.permute.xlu0 %334  ;;  %v337_v34 = vpop.permute.xlu1 %336 }
 0x608   :  { %v340_v38 = vadd.f32 %v335_v30, %v307_v36  ;;  %v341_v43 = vadd.f32 %v337_v34, %v308_v37  ;;  %v1947_v36 = vrot.slane %v2584_v29, %v328_v22 }
 0x60b   :  { %v368_v39 = vpop.permute.xlu0 %367  ;;  %v370_v35 = vpop.permute.xlu1 %369 }
 0x60c   :  { %v373_v46 = vadd.f32 %v368_v39, %v340_v38  ;;  %v374_v45 = vadd.f32 %v370_v35, %v341_v43 }
 0x60e   :  { %v375_v48 = vadd.f32 %v373_v46, %v2847_v56  ;;  %v376_v49 = vadd.f32 %v374_v45, %v2821_v24  ;;  %v56_v45 = vld [vmem:[#allocation2 + $0x90] sm:$0xff] }
 0x610   :  { %v377_v44 = vmul.f32 %v375_v48, %v2840_v54  ;;  %v378_v50 = vmul.f32 %v376_v49, %v2815_v40  ;;  %v57_v48 = vld [vmem:[#allocation2 + $0x98] sm:$0xff] }
 0x611   :  { %v2405_v49 = vpack.c.bf16 %v57_v48, %v56_v45 }
 0x612   :  { %1904 = vrot.lane.b32.xlu0 %v377_v44, %s2519_s1  ;;  %1906 = vrot.lane.b32.xlu1 %v378_v50, %s2519_s1  ;;  %v2462_v44 = vld [vmem:[#allocation2 + $0xa0] sm:$0xff] }
 0x613   :  { %2406 = vmatprep.subr.bf16.mxu0 %v2405_v49  ;;  %v1953_v50 = vrot.slane %v2462_v44, %v1952_v51 }
 0x614   :  { %2408 = vmatpush3.bf16.msra.mxu0 %v2405_v49 }
 0x684   :  { %v1907_v42 = vpop.permute.xlu1 %1906  ;;  %v1905_v54 = vpop.permute.xlu0 %1904 }
 0x6c2   :  { %v2338_v58 = vpop.f32.mrb[14].mxu0 }
 0x6c3   :  { %v1897_v62 = vadd.f32 %v2338_v58, %v1818_v53  ;;  %v1891_v47 = vpop.f32.mrb[15].mxu0 }
 0x6c4   :  { %v1892_v20 = vadd.f32 %v1891_v47, %v1818_v53  ;;  %v2039_v47 = vsub.s32 7, %v2579_v26 }
 0x6c5   :  { %v1901_v56 = vadd.f32 %v1897_v62, %v2569_v1 }
 0x6c6   :  { %v1900_v24 = vadd.f32 %v1892_v20, %v2564_v0  ;;  %v2040_v20 = vrot.slane %v2462_v44, %v2039_v47 }
 0x6c7   :  { %v2916_v52 = vadd.f32 %v1907_v42, %v1901_v56 }
 0x6c8   :  { %v2918_v40 = vadd.f32 %v1905_v54, %v1900_v24 }
 0x6c9   :  { %v1915_v57 = vsel %vm61_vm0, %v2916_v52, 0.0 }
 0x6ca   :  { %1916 = vadd.xlane.f32.xlu1 %v1915_v57  ;;  %v1912_v59 = vsel %vm61_vm0, %v2918_v40, 0.0 }
 0x6cb   :  { %1913 = vadd.xlane.f32.xlu0 %v1912_v59 }
 0x757   :  { %v1917_v63 = vpop.xlane.xlu1 %1916 }
 0x758   :  { %v1919_v2 = vmul.f32 0.03125, %v1917_v63  ;;  %v1914_v3 = vpop.xlane.xlu0 %1913 }
 0x759   :  { %v1918_v1 = vmul.f32 0.03125, %v1914_v3 }
 0x75a   :  { %v1921_v61 = vsub.f32 %v2916_v52, %v1919_v2 }
 0x75b   :  { %v1920_v0 = vsub.f32 %v2918_v40, %v1918_v1 }
 0x75c   :  { %v1923_v32 = vmul.f32 %v1921_v61, %v1921_v61 }
 0x75d   :  { %v1922_v60 = vmul.f32 %v1920_v0, %v1920_v0 }
 0x75e   :  { %v1927_v4 = vsel %vm61_vm0, %v1923_v32, 0.0 }
 0x75f   :  { %v1924_v41 = vsel %vm61_vm0, %v1922_v60, 0.0 }
 0x760   :  { %1925 = vadd.xlane.f32.xlu0 %v1924_v41 }
 0x764   :  { %1928 = vadd.xlane.f32.xlu0 %v1927_v4 }
 0x7ed   :  { %v1926_v19 = vpop.xlane.xlu0 %1925 }
 0x7ee   :  { %v1930_v21 = vmul.f32 0.03125, %v1926_v19 }
 0x7f0   :  { %v1932_v23 = vadd.f32 1e-05, %v1930_v21 }
 0x7f1   :  { %v1929_v25 = vpop.xlane.xlu0 %1928 }
 0x7f2   :  { %2458 = vrsqrt.f32 %v1932_v23  ;;  %v1931_v27 = vmul.f32 0.03125, %v1929_v25 }
 0x7f4   :  { %v1933_v31 = vadd.f32 1e-05, %v1931_v27 }
 0x7f6   :  { %2460 = vrsqrt.f32 %v1933_v31 }
 0x7fc   :  { %v2459_v30 = vpop.eup %2458 }
 0x7fd   :  { %v1936_v34 = vmul.f32 %v2459_v30, %v1920_v0 }
 0x7ff   :  { %v1942_v37 = vmul.f32 %v1941_v33, %v1936_v34 }
 0x800   :  { %v2461_v38 = vpop.eup %2460 }
 0x801   :  { %v1937_v43 = vmul.f32 %v2461_v38, %v1921_v61  ;;  %v1948_v39 = vadd.f32 %v1947_v36, %v1942_v37 }
 0x803   :  { %v1943_v35 = vmul.f32 %v1941_v33, %v1937_v43  ;;  %2347 = vmatprep.mubr.msk.f32.mxu1 %vm61_vm0, %v1948_v39 }
 0x805   :  { %v1949_v46 = vadd.f32 %v1947_v36, %v1943_v35 }
 0x807   :  { %2348 = vmatmul.mubr.msk.f32.vlgmr.msra.gmra.mrb[20].mxu1 %vm61_vm0, %v1949_v46 }
 0x8da   :  { %v2349_v29 = vpop.f32.mrb[20].mxu1 }
 0x8db   :  { %v2032_v22 = vadd.f32 %v2349_v29, %v1953_v50  ;;  %v2026_v55 = vpop.f32.mrb[21].mxu1 }
 0x8dc   :  { %v2027_v53 = vadd.f32 %v2026_v55, %v1953_v50 }
 0x8dd   :  { %v2036_v62 = vmax.f32 %v2032_v22, 0.0 }
 0x8de   :  { %v2035_v58 = vmax.f32 %v2027_v53, 0.0 }
 0x8e0   :  { %2366 = vmatprep.mubr.msk.f32.mxu0 %vm2041_vm4, %v2035_v58 }
 0x8e1   :  { %2367 = vmatmul.mubr.msk.f32.vlgmr.msra.gmra.mrb[16].mxu0 %vm2041_vm4, %v2036_v62 }
 0x9b4   :  { %v2368_v56 = vpop.f32.mrb[16].mxu0 }
 0x9b5   :  { %v2120_v42 = vadd.f32 %v2368_v56, %v2040_v20  ;;  %v2114_v24 = vpop.f32.mrb[17].mxu0 }
 0x9b6   :  { %v2115_v54 = vadd.f32 %v2114_v24, %v2040_v20 }
 0x9b7   :  { %v2124_v57 = vadd.f32 %v2120_v42, %v2916_v52 }
 0x9b8   :  { %v2123_v59 = vadd.f32 %v2115_v54, %v2918_v40 }
 0x9b9   :  { %2126 = vst.msk [vmem:[#allocation5 + $0x8] sm:$0xff] %vm61_vm0, %v2124_v57 }
 0x9ba   :  { %2125 = vst.msk [vmem:[#allocation5] sm:$0xff] %vm61_vm0, %v2123_v59 }
 0x9bb   :  { %2496 = shalt.err (!%p2493_p12)
}
 0x9bc   :  { %s2497_s18 = scalar_lea.hbm %s2961_s4, 256 }
 0x9bd   :  { %p2498_p13 = scmp.ne.s32.totalorder %s2961_s4, %s2497_s18  ;;  %p2501_p0 = scmp.lt.u32.totalorder %s2497_s18, %s2961_s4 }
 0x9bf   :  { %p2503_p1 = pnand %p2501_p0, %p2498_p13 }
 0x9c1   :  { %2506 = shalt.err (!%p2503_p1)
}
 0x9c2   :  { %2138 = dma.vmem_to_hbm [thread:$0]  %s2133_s14, 256, %s2961_s4, [#allocation4], %s2512_s25, %s2512_s25, %s2513_s26  }
 0x9c3   :  { %2509 = dma.done.wait [#allocation4], 256  }
 0x9c4   :  { %2510 = vsyncadd [#allocation4], 4294967040 }
 0x9c5   :  { %2142 = vsyncpa [#allocation3], 1 }
 0x9c6   :  { %2143 = vsyncpa [#allocation4], 1 }

</bundles_post_ra>
